<compile_context>
chip_gen: v6e
topology: v6e:2x2x1
jax: 0.10.0
libtpu: 0.0.40
codegen_flags: <defaults>
</compile_context>

<pallas_src>
import functools

import jax
import jax.numpy as jnp
from jax import lax
from jax.experimental import pallas as pl
from jax.experimental.pallas import tpu as pltpu


# ----------------------------- Pallas kernel -------------------------------

def _hetconv_kernel(x_ref, w_ref, b_ref, o_ref, col_ref, *, TH, W, Cp):
    # x_ref:   (1, 1, TH+2, W+2, Cp)  bf16  padded input window (halo rows)
    # w_ref:   (9*Cp, Cp)             bf16  row = (ky*3 + kx)*Cp + c_in
    # b_ref:   (1, Cp)                f32   per-output-channel bias
    # o_ref:   (1, TH, W, Cp)               output tile
    # col_ref: (TH*W, 9*Cp)           bf16  VMEM im2col staging buffer
    for dy in range(3):
        for dx in range(3):
            k = dy * 3 + dx
            col_ref[:, k * Cp:(k + 1) * Cp] = (
                x_ref[0, 0, dy:dy + TH, dx:dx + W, :].reshape(TH * W, Cp))
    # One deep matmul: (TH*W, 9*Cp) x (9*Cp, Cp), f32 accumulation.
    acc = jnp.dot(col_ref[...], w_ref[...],
                  preferred_element_type=jnp.float32)
    acc = acc + b_ref[...]                      # (1, Cp) broadcasts over rows
    o_ref[...] = acc.reshape(1, TH, W, Cp).astype(o_ref.dtype)


def _round_up(x, m):
    return (x + m - 1) // m * m


def hetconv2d_pallas(x_nchw, w_dense, b_dense, *, tile_h=8):
    """x_nchw: (N, C, H, W); w_dense: (3, 3, C_in, C_out); b_dense: (C,)."""
    N, C, H, W = x_nchw.shape
    Cp = _round_up(max(C, 128), 128)      # lane-dense channel count
    Hp = _round_up(H, tile_h)
    nH = Hp // tile_h

    # NCHW -> NHWC, bf16 operands; pad channels + conv halo (+ bottom rows to
    # a multiple of tile_h; the extra rows are zeros and sliced away below).
    x = jnp.transpose(x_nchw, (0, 2, 3, 1)).astype(jnp.bfloat16)
    x = jnp.pad(x, ((0, 0), (1, 1 + Hp - H), (1, 1), (0, Cp - C)))
    # Overlapping (tile_h + 2)-row halo windows: (N, nH, tile_h+2, W+2, Cp)
    windows = jnp.stack(
        [x[:, h * tile_h:h * tile_h + tile_h + 2] for h in range(nH)], axis=1)

    # Dense 3x3 weights (ky, kx, c_in, c_out) -> channel-padded (9*Cp, Cp).
    w = jnp.pad(w_dense,
                ((0, 0), (0, 0), (0, Cp - C), (0, Cp - C))).astype(jnp.bfloat16)
    w_flat = w.reshape(9 * Cp, Cp)
    b2 = jnp.pad(b_dense, (0, Cp - C)).reshape(1, Cp).astype(jnp.float32)

    kernel = functools.partial(_hetconv_kernel, TH=tile_h, W=W, Cp=Cp)
    flops = 2 * N * Hp * W * 9 * Cp * Cp
    bytes_accessed = (windows.size * 2 + w_flat.size * 2 + b2.size * 4
                      + N * Hp * W * Cp * 4)

    out_nhwc = pl.pallas_call(
        kernel,
        out_shape=jax.ShapeDtypeStruct((N, Hp, W, Cp), x_nchw.dtype),
        grid_spec=pltpu.PrefetchScalarGridSpec(
            num_scalar_prefetch=0,
            grid=(N, nH),
            in_specs=[
                pl.BlockSpec((1, 1, tile_h + 2, W + 2, Cp),
                             lambda n, h: (n, h, 0, 0, 0)),
                pl.BlockSpec((9 * Cp, Cp), lambda n, h: (0, 0)),
                pl.BlockSpec((1, Cp), lambda n, h: (0, 0)),
            ],
            out_specs=pl.BlockSpec((1, tile_h, W, Cp),
                                   lambda n, h: (n, h, 0, 0)),
            scratch_shapes=[pltpu.VMEM((tile_h * W, 9 * Cp), jnp.bfloat16)],
        ),
        compiler_params=pltpu.CompilerParams(
            dimension_semantics=("parallel", "parallel"),
            vmem_limit_bytes=32 * 1024 * 1024),
        cost_estimate=pl.CostEstimate(
            flops=flops, transcendentals=0, bytes_accessed=bytes_accessed),
    )(windows, w_flat, b2)

    out_nhwc = out_nhwc[:, :H, :, :C]
    return jnp.transpose(out_nhwc, (0, 3, 1, 2))


# ---------------------- deterministic parameter setup ----------------------

def make_hetconv_params(n_feats, p, key, dtype=jnp.float32):
    """Build dense-3x3 weights/bias equivalent to HetConv2d's per-pair convs."""
    k3, k1, kb = jax.random.split(key, 3)
    w3 = 0.1 * jax.random.normal(k3, (n_feats, n_feats, 3, 3), dtype)  # 3x3
    w1 = 0.1 * jax.random.normal(k1, (n_feats, n_feats), dtype)        # 1x1
    b = 0.1 * jax.random.normal(kb, (n_feats, n_feats), dtype)         # bias_{i,j}

    i_idx = jnp.arange(n_feats)[:, None]   # output channel i
    j_idx = jnp.arange(n_feats)[None, :]   # input channel j
    is3 = ((j_idx - i_idx) % p) == 0       # blocks[i][j] is a 3x3 conv

    # (i, j, 3, 3): full 3x3 kernel where is3, else 1x1 value at the center.
    w_oihw = jnp.where(is3[:, :, None, None], w3, 0.0)
    w_oihw = w_oihw.at[:, :, 1, 1].add(jnp.where(is3, 0.0, w1))

    w_dense = jnp.transpose(w_oihw, (2, 3, 1, 0))   # (ky, kx, c_in=j, c_out=i)
    b_dense = jnp.sum(b, axis=1)                    # bias_i = sum_j bias_{i,j}
    return w_dense, b_dense, w_oihw


def reference_forward(x_nchw, w_oihw, b_dense):
    """Pure-JAX reference: dense 3x3 conv in NCHW/OIHW, pad 1, plus bias."""
    out = lax.conv_general_dilated(
        x_nchw, w_oihw, window_strides=(1, 1), padding=((1, 1), (1, 1)),
        dimension_numbers=("NCHW", "OIHW", "NCHW"),
        precision=lax.Precision.HIGHEST)
    return out + b_dense[None, :, None, None]


# --------------------------------- main -------------------------------------

if __name__ == "__main__":
    key = jax.random.PRNGKey(0)
    kx, kp = jax.random.split(key)

    N, n_feats, H, W = 2, 4, 16, 16
    p = 2  # HetConv period (default in the module is 32)

    x = jax.random.normal(kx, (N, n_feats, H, W), jnp.float32)
    w_dense, b_dense, w_oihw = make_hetconv_params(n_feats, p, kp)

    out = jax.block_until_ready(hetconv2d_pallas(x, w_dense, b_dense))

    # Reference on bf16-rounded operands (kernel uses bf16 inputs/weights with
    # f32 accumulation), so the comparison stays tight.
    xq = x.astype(jnp.bfloat16).astype(jnp.float32)
    wq = w_oihw.astype(jnp.bfloat16).astype(jnp.float32)
    ref = reference_forward(xq, wq, b_dense)

    assert out.shape == (N, n_feats, H, W)
    max_err = float(jnp.max(jnp.abs(out - ref)))
    assert jnp.allclose(out, ref, atol=2e-3, rtol=2e-3), max_err

    print("KERNEL_OK")
</pallas_src>

<mosaic_0001>
module attributes {stable_mosaic.version = 11 : i64} {
  func.func @_hetconv_kernel(%arg0: i32, %arg1: i32, %arg2: memref<1x1x10x18x128xbf16, #tpu.memory_space<vmem>>, %arg3: memref<1152x128xbf16, #tpu.memory_space<vmem>>, %arg4: memref<1x128xf32, #tpu.memory_space<vmem>>, %arg5: memref<1x8x16x128xf32, #tpu.memory_space<vmem>>, %arg6: memref<128x1152xbf16, #tpu.memory_space<vmem>>) attributes {dimension_semantics = [#tpu.dimension_semantics<parallel>, #tpu.dimension_semantics<parallel>], iteration_bounds = array<i64: 2, 2>, scalar_prefetch = 0 : i64, scratch_operands = 1 : i64, tpu.core_type = #tpu.core_type<tc>, window_params = [{transform_indices = @transform_0, window_bounds = array<i64: 1, 1, 10, 18, 128>}, {pipeline_mode = #tpu.pipeline_mode<synchronous>, transform_indices = @transform_1, window_bounds = array<i64: 1152, 128>}, {pipeline_mode = #tpu.pipeline_mode<synchronous>, transform_indices = @transform_2, window_bounds = array<i64: 1, 128>}, {transform_indices = @transform_3, window_bounds = array<i64: 1, 8, 16, 128>}]} {
    %c0 = arith.constant 0 : index
    %c0_0 = arith.constant 0 : index
    %c0_1 = arith.constant 0 : index
    %c0_2 = arith.constant 0 : index
    %c0_3 = arith.constant 0 : index
    %0 = vector.load %arg2[%c0, %c0_0, %c0_1, %c0_2, %c0_3] : memref<1x1x10x18x128xbf16, #tpu.memory_space<vmem>>, vector<1x1x8x16x128xbf16>
    %1 = vector.shape_cast %0 : vector<1x1x8x16x128xbf16> to vector<8x16x128xbf16>
    %2 = vector.shape_cast %1 : vector<8x16x128xbf16> to vector<128x128xbf16>
    %c0_4 = arith.constant 0 : index
    %c0_5 = arith.constant 0 : index
    %3 = vector.load %arg6[%c0_4, %c0_5] : memref<128x1152xbf16, #tpu.memory_space<vmem>>, vector<128x128xbf16>
    tpu.vector_store %arg6[%c0_4, %c0_5], %2 {strides = array<i32>} : memref<128x1152xbf16, #tpu.memory_space<vmem>>, vector<128x128xbf16>,
    %c0_6 = arith.constant 0 : index
    %c0_7 = arith.constant 0 : index
    %c0_8 = arith.constant 0 : index
    %c1 = arith.constant 1 : index
    %c0_9 = arith.constant 0 : index
    %4 = vector.load %arg2[%c0_6, %c0_7, %c0_8, %c1, %c0_9] : memref<1x1x10x18x128xbf16, #tpu.memory_space<vmem>>, vector<1x1x8x16x128xbf16>
    %5 = vector.shape_cast %4 : vector<1x1x8x16x128xbf16> to vector<8x16x128xbf16>
    %6 = vector.shape_cast %5 : vector<8x16x128xbf16> to vector<128x128xbf16>
    %c0_10 = arith.constant 0 : index
    %c128 = arith.constant 128 : index
    %7 = vector.load %arg6[%c0_10, %c128] : memref<128x1152xbf16, #tpu.memory_space<vmem>>, vector<128x128xbf16>
    tpu.vector_store %arg6[%c0_10, %c128], %6 {strides = array<i32>} : memref<128x1152xbf16, #tpu.memory_space<vmem>>, vector<128x128xbf16>,
    %c0_11 = arith.constant 0 : index
    %c0_12 = arith.constant 0 : index
    %c0_13 = arith.constant 0 : index
    %c2 = arith.constant 2 : index
    %c0_14 = arith.constant 0 : index
    %8 = vector.load %arg2[%c0_11, %c0_12, %c0_13, %c2, %c0_14] : memref<1x1x10x18x128xbf16, #tpu.memory_space<vmem>>, vector<1x1x8x16x128xbf16>
    %9 = vector.shape_cast %8 : vector<1x1x8x16x128xbf16> to vector<8x16x128xbf16>
    %10 = vector.shape_cast %9 : vector<8x16x128xbf16> to vector<128x128xbf16>
    %c0_15 = arith.constant 0 : index
    %c256 = arith.constant 256 : index
    %11 = vector.load %arg6[%c0_15, %c256] : memref<128x1152xbf16, #tpu.memory_space<vmem>>, vector<128x128xbf16>
    tpu.vector_store %arg6[%c0_15, %c256], %10 {strides = array<i32>} : memref<128x1152xbf16, #tpu.memory_space<vmem>>, vector<128x128xbf16>,
    %c0_16 = arith.constant 0 : index
    %c0_17 = arith.constant 0 : index
    %c1_18 = arith.constant 1 : index
    %c0_19 = arith.constant 0 : index
    %c0_20 = arith.constant 0 : index
    %12 = vector.load %arg2[%c0_16, %c0_17, %c1_18, %c0_19, %c0_20] : memref<1x1x10x18x128xbf16, #tpu.memory_space<vmem>>, vector<1x1x8x16x128xbf16>
    %13 = vector.shape_cast %12 : vector<1x1x8x16x128xbf16> to vector<8x16x128xbf16>
    %14 = vector.shape_cast %13 : vector<8x16x128xbf16> to vector<128x128xbf16>
    %c0_21 = arith.constant 0 : index
    %c384 = arith.constant 384 : index
    %15 = vector.load %arg6[%c0_21, %c384] : memref<128x1152xbf16, #tpu.memory_space<vmem>>, vector<128x128xbf16>
    tpu.vector_store %arg6[%c0_21, %c384], %14 {strides = array<i32>} : memref<128x1152xbf16, #tpu.memory_space<vmem>>, vector<128x128xbf16>,
    %c0_22 = arith.constant 0 : index
    %c0_23 = arith.constant 0 : index
    %c1_24 = arith.constant 1 : index
    %c1_25 = arith.constant 1 : index
    %c0_26 = arith.constant 0 : index
    %16 = vector.load %arg2[%c0_22, %c0_23, %c1_24, %c1_25, %c0_26] : memref<1x1x10x18x128xbf16, #tpu.memory_space<vmem>>, vector<1x1x8x16x128xbf16>
    %17 = vector.shape_cast %16 : vector<1x1x8x16x128xbf16> to vector<8x16x128xbf16>
    %18 = vector.shape_cast %17 : vector<8x16x128xbf16> to vector<128x128xbf16>
    %c0_27 = arith.constant 0 : index
    %c512 = arith.constant 512 : index
    %19 = vector.load %arg6[%c0_27, %c512] : memref<128x1152xbf16, #tpu.memory_space<vmem>>, vector<128x128xbf16>
    tpu.vector_store %arg6[%c0_27, %c512], %18 {strides = array<i32>} : memref<128x1152xbf16, #tpu.memory_space<vmem>>, vector<128x128xbf16>,
    %c0_28 = arith.constant 0 : index
    %c0_29 = arith.constant 0 : index
    %c1_30 = arith.constant 1 : index
    %c2_31 = arith.constant 2 : index
    %c0_32 = arith.constant 0 : index
    %20 = vector.load %arg2[%c0_28, %c0_29, %c1_30, %c2_31, %c0_32] : memref<1x1x10x18x128xbf16, #tpu.memory_space<vmem>>, vector<1x1x8x16x128xbf16>
    %21 = vector.shape_cast %20 : vector<1x1x8x16x128xbf16> to vector<8x16x128xbf16>
    %22 = vector.shape_cast %21 : vector<8x16x128xbf16> to vector<128x128xbf16>
    %c0_33 = arith.constant 0 : index
    %c640 = arith.constant 640 : index
    %23 = vector.load %arg6[%c0_33, %c640] : memref<128x1152xbf16, #tpu.memory_space<vmem>>, vector<128x128xbf16>
    tpu.vector_store %arg6[%c0_33, %c640], %22 {strides = array<i32>} : memref<128x1152xbf16, #tpu.memory_space<vmem>>, vector<128x128xbf16>,
    %c0_34 = arith.constant 0 : index
    %c0_35 = arith.constant 0 : index
    %c2_36 = arith.constant 2 : index
    %c0_37 = arith.constant 0 : index
    %c0_38 = arith.constant 0 : index
    %24 = vector.load %arg2[%c0_34, %c0_35, %c2_36, %c0_37, %c0_38] : memref<1x1x10x18x128xbf16, #tpu.memory_space<vmem>>, vector<1x1x8x16x128xbf16>
    %25 = vector.shape_cast %24 : vector<1x1x8x16x128xbf16> to vector<8x16x128xbf16>
    %26 = vector.shape_cast %25 : vector<8x16x128xbf16> to vector<128x128xbf16>
    %c0_39 = arith.constant 0 : index
    %c768 = arith.constant 768 : index
    %27 = vector.load %arg6[%c0_39, %c768] : memref<128x1152xbf16, #tpu.memory_space<vmem>>, vector<128x128xbf16>
    tpu.vector_store %arg6[%c0_39, %c768], %26 {strides = array<i32>} : memref<128x1152xbf16, #tpu.memory_space<vmem>>, vector<128x128xbf16>,
    %c0_40 = arith.constant 0 : index
    %c0_41 = arith.constant 0 : index
    %c2_42 = arith.constant 2 : index
    %c1_43 = arith.constant 1 : index
    %c0_44 = arith.constant 0 : index
    %28 = vector.load %arg2[%c0_40, %c0_41, %c2_42, %c1_43, %c0_44] : memref<1x1x10x18x128xbf16, #tpu.memory_space<vmem>>, vector<1x1x8x16x128xbf16>
    %29 = vector.shape_cast %28 : vector<1x1x8x16x128xbf16> to vector<8x16x128xbf16>
    %30 = vector.shape_cast %29 : vector<8x16x128xbf16> to vector<128x128xbf16>
    %c0_45 = arith.constant 0 : index
    %c896 = arith.constant 896 : index
    %31 = vector.load %arg6[%c0_45, %c896] : memref<128x1152xbf16, #tpu.memory_space<vmem>>, vector<128x128xbf16>
    tpu.vector_store %arg6[%c0_45, %c896], %30 {strides = array<i32>} : memref<128x1152xbf16, #tpu.memory_space<vmem>>, vector<128x128xbf16>,
    %c0_46 = arith.constant 0 : index
    %c0_47 = arith.constant 0 : index
    %c2_48 = arith.constant 2 : index
    %c2_49 = arith.constant 2 : index
    %c0_50 = arith.constant 0 : index
    %32 = vector.load %arg2[%c0_46, %c0_47, %c2_48, %c2_49, %c0_50] : memref<1x1x10x18x128xbf16, #tpu.memory_space<vmem>>, vector<1x1x8x16x128xbf16>
    %33 = vector.shape_cast %32 : vector<1x1x8x16x128xbf16> to vector<8x16x128xbf16>
    %34 = vector.shape_cast %33 : vector<8x16x128xbf16> to vector<128x128xbf16>
    %c0_51 = arith.constant 0 : index
    %c1024 = arith.constant 1024 : index
    %35 = vector.load %arg6[%c0_51, %c1024] : memref<128x1152xbf16, #tpu.memory_space<vmem>>, vector<128x128xbf16>
    tpu.vector_store %arg6[%c0_51, %c1024], %34 {strides = array<i32>} : memref<128x1152xbf16, #tpu.memory_space<vmem>>, vector<128x128xbf16>,
    %c0_52 = arith.constant 0 : index
    %c0_53 = arith.constant 0 : index
    %36 = vector.load %arg6[%c0_52, %c0_53] : memref<128x1152xbf16, #tpu.memory_space<vmem>>, vector<128x1152xbf16>
    %c0_54 = arith.constant 0 : index
    %c0_55 = arith.constant 0 : index
    %37 = vector.load %arg3[%c0_54, %c0_55] : memref<1152x128xbf16, #tpu.memory_space<vmem>>, vector<1152x128xbf16>
    %cst = arith.constant dense<0.000000e+00> : vector<128x128xf32>
    %38 = tpu.matmul %36, %37, %cst {dimension_numbers = #tpu.dot_dimension_numbers<[1], [0], [0], [1], [0, 0, 1, 1], [], []>} : vector<128x1152xbf16>, vector<1152x128xbf16>, vector<128x128xf32> -> vector<128x128xf32>
    %c0_56 = arith.constant 0 : index
    %c0_57 = arith.constant 0 : index
    %39 = vector.load %arg4[%c0_56, %c0_57] : memref<1x128xf32, #tpu.memory_space<vmem>>, vector<1x128xf32>
    %40 = vector.broadcast %39 : vector<1x128xf32> to vector<128x128xf32>
    %41 = arith.addf %38, %40 : vector<128x128xf32>
    %42 = vector.shape_cast %41 : vector<128x128xf32> to vector<1x8x16x128xf32>
    %c0_58 = arith.constant 0 : index
    %c0_59 = arith.constant 0 : index
    %c0_60 = arith.constant 0 : index
    %c0_61 = arith.constant 0 : index
    %43 = vector.load %arg5[%c0_58, %c0_59, %c0_60, %c0_61] : memref<1x8x16x128xf32, #tpu.memory_space<vmem>>, vector<1x8x16x128xf32>
    tpu.vector_store %arg5[%c0_58, %c0_59, %c0_60, %c0_61], %42 {strides = array<i32>} : memref<1x8x16x128xf32, #tpu.memory_space<vmem>>, vector<1x8x16x128xf32>,
    return
  }
  func.func @transform_0(%arg0: i32, %arg1: i32) -> (i32, i32, i32, i32, i32) {
    %c0_i32 = arith.constant 0 : i32
    %c0_i32_0 = arith.constant 0 : i32
    %c0_i32_1 = arith.constant 0 : i32
    %c0_i32_2 = arith.constant 0 : i32
    return %arg0, %arg1, %c0_i32, %c0_i32_0, %c0_i32_1 : i32, i32, i32, i32, i32
  }
  func.func @transform_1(%arg0: i32, %arg1: i32) -> (i32, i32) {
    %c0_i32 = arith.constant 0 : i32
    %c0_i32_0 = arith.constant 0 : i32
    %c0_i32_1 = arith.constant 0 : i32
    return %c0_i32, %c0_i32_0 : i32, i32
  }
  func.func @transform_2(%arg0: i32, %arg1: i32) -> (i32, i32) {
    %c0_i32 = arith.constant 0 : i32
    %c0_i32_0 = arith.constant 0 : i32
    %c0_i32_1 = arith.constant 0 : i32
    return %c0_i32, %c0_i32_0 : i32, i32
  }
  func.func @transform_3(%arg0: i32, %arg1: i32) -> (i32, i32, i32, i32) {
    %c0_i32 = arith.constant 0 : i32
    %c0_i32_0 = arith.constant 0 : i32
    %c0_i32_1 = arith.constant 0 : i32
    return %arg0, %arg1, %c0_i32, %c0_i32_0 : i32, i32, i32, i32
  }
}

</mosaic_0001>

<bundles_post_ra>
// kernel: tpu_custom_call.1
= control target key start
LH: loop header
LB: loop body
LE: loop exit
PB: predicated region body
PF: predicated region fallthrough
CT: control target
= control target key end

     0   :  { %8 = vsyncpa [#allocation4], 0  ;;  %s5073_s0 = inlined_call_operand.vmem [shape: bf16[2,2,10,18,128], index: 0, kind: input, shape index: {}]   ;;  %s5074_s1 = inlined_call_operand.vmem [shape: bf16[1152,128], index: 1, kind: input, shape index: {}]   ;;  %s5075_s2 = inlined_call_operand.vmem [shape: f32[1,128], index: 2, kind: input, shape index: {}]   ;;  %s5076_s3 = inlined_call_operand.hbm [shape: f32[2,16,16,128], index: 3, kind: output, shape index: {}]  }
   0x1   :  { %10 = vsyncpa [#allocation4 + $0x1], 0  ;;  %s4075_s12 = smov 0   ;;  %s4077_s13 = smov 0  }
   0x2   :  { %s4079_s14 = smov 0   ;;  %s4081_s15 = smov 0  }
   0x3   :  { %s4083_s16 = smov 0   ;;  %s4085_s17 = smov 0  }
   0x4   :  { %s4087_s18 = smov 0   ;;  %s4089_s19 = smov 0  }
   0x5 LB: > { %s3089_s20 = sadd.s32 4294967295, %s4050_s19   ;;  %s3090_s21 = sadd.s32 4294967294, %s4050_s19   ;;  %s4050_s19 = sphi %s4089_s19, %s16_s19   ;;  %s4046_s18 = sphi %s4087_s18, %s5133_s18   ;;  %s4042_s17 = sphi %s4085_s17, %s5132_s17   ;;  %s4038_s16 = sphi %s4083_s16, %s5131_s16   ;;  %s4034_s15 = sphi %s4081_s15, %s5130_s15   ;;  %s4030_s14 = sphi %s4079_s14, %s5129_s14   ;;  %s4026_s13 = sphi %s4077_s13, %s5128_s13   ;;  %s4022_s12 = sphi %s4075_s12, %s5127_s12  }
   0x6   : > { %s25_s22 = sadd.s32 1, %s4042_s17  ;;  %s28_s23 = sadd.s32 1, %s4046_s18 }
   0x7   : > { %p26_p0 = scmp.ge.s32.totalorder %s25_s22, 2  ;;  %p117_p1 = scmp.ne.s32.totalorder %s4030_s14, %s4026_s13 }
   0x8   : > { %p118_p2 = scmp.eq.s32.totalorder %s3089_s20, 3  ;;  %p123_p5 = scmp.ne.s32.totalorder %s4026_s13, %s4022_s12 }
   0x9   : > { %s5135_s22 = smov (%p26_p0, %s25_s22), 0  ;;  %s5137_s23 = smov (!%p26_p0, %s28_s23), %s4046_s18 }
   0xa   : > { %s103_s24 = ssub.s32 %s4042_s17, %s5135_s22  ;;  %p4126_p3 = por %p118_p2, %p117_p1 }
   0xb   : > { %p30_p4 = scmp.ge.s32.totalorder %s5137_s23, 2  ;;  %p124_p6 = scmp.eq.s32.totalorder %s3090_s21, 3 }
   0xc   : > { %p3093_p7 = scmp.ge.s32.totalorder %s4050_s19, 1  ;;  %p160_p9 = scmp.lt.s32.totalorder %s4050_s19, 5 }
   0xd   : > { %s5139_s23 = smov (%p30_p4, %s5137_s23), 0  ;;  %p4135_p8 = por %p124_p6, %p123_p5 }
   0xe   : > { %s102_s27 = ssub.s32 %s4046_s18, %s5139_s23  ;;  %s107_s28 = sadd.s32 1, %s4030_s14 }
   0xf   : > { %s104_s29 = sor.u32 %s103_s24, %s102_s27  ;;  %p161_p10 = pnand %p3093_p7, %p160_p9 }
  0x10   : > { %p105_p11 = scmp.eq.s32.totalorder %s104_s29, 0 }
  0x11   : > { %164 = sbr.rel (%p161_p10) target bundleno = 470 (0x1d6), region = 32 }
  0x12   : > { %s4144_s30 = scalar_select %p105_p11, %s4030_s14, %s107_s28  }
  0x16   : > { %v3796_v0 = vld [vmem:[%s5074_s1 + $0x78] sm:$0xff]   ;;  %v3800_v4 = vld [vmem:[%s5074_s1 + $0x70] sm:$0xff]   ;;  %v3804_v8 = vld [vmem:[%s5074_s1 + $0x68] sm:$0xff]   ;;  %p188_p12 = scmp.lt.s32.totalorder %s4038_s16, 1  ;;  %p190_p13 = scmp.lt.s32.totalorder %s4034_s15, 1  ;;  %vm530_vm0 = vcmask 1042432  }
  0x17   : > { %v3797_v1 = vld [vmem:[%s5074_s1 + $0xf8] sm:$0xff]   ;;  %3401 = vmatprep.subr.bf16.mxu0 %v3796_v0  ;;  %v3801_v5 = vld [vmem:[%s5074_s1 + $0xf0] sm:$0xff]   ;;  %v3805_v9 = vld [vmem:[%s5074_s1 + $0xe8] sm:$0xff]   ;;  %vm531_vm1 = vcmask 1046532   ;;  %vm255_vm2 = vsmask.f32 3328 }
  0x18   : > { %v3798_v2 = vld [vmem:[%s5074_s1 + $0x38] sm:$0xff]   ;;  %3465 = vmatprep.subr.bf16.mxu1 %v3797_v1  ;;  %v3802_v6 = vld [vmem:[%s5074_s1 + $0x30] sm:$0xff]   ;;  %v3806_v10 = vld [vmem:[%s5074_s1 + $0x28] sm:$0xff]   ;;  %s189_s6 = scalar_select %p188_p12, %s4038_s16, 1  ;;  %vm256_vm3 = vsmask.f32 7440 }
  0x19   : > { %v3799_v3 = vld [vmem:[%s5074_s1 + $0xb8] sm:$0xff]   ;;  %3402 = vmatpush3.bf16.msra.mxu0 %v3798_v2  ;;  %v3803_v7 = vld [vmem:[%s5074_s1 + $0xb0] sm:$0xff]   ;;  %v3807_v11 = vld [vmem:[%s5074_s1 + $0xa8] sm:$0xff]   ;;  %s191_s9 = scalar_select %p190_p13, %s4034_s15, 1 }
  0x1a   : > { %3466 = vmatpush3.bf16.msra.mxu1 %v3799_v3  ;;  %3403 = vmatprep.subr.bf16.mxu0 %v3800_v4  ;;  %v3808_v12 = vld [vmem:[%s5074_s1 + $0x60] sm:$0xff]   ;;  %v3812_v16 = vld [vmem:[%s5074_s1 + $0x58] sm:$0xff]   ;;  %s3722_s28 = smul.u32 60, %s189_s6  ;;  %v3816_v20 = vld [vmem:[%s5074_s1 + $0x50] sm:$0xff]   ;;  %s3400_s24 = sshll.u32 %s4034_s15, 4 }
  0x1b   : > { %3467 = vmatprep.subr.bf16.mxu1 %v3801_v5  ;;  %v3809_v13 = vld [vmem:[%s5074_s1 + $0xe0] sm:$0xff]   ;;  %v3813_v17 = vld [vmem:[%s5074_s1 + $0xd8] sm:$0xff]   ;;  %s3721_s5 = smul.u32 30, %s191_s9  ;;  %v3817_v21 = vld [vmem:[%s5074_s1 + $0xd0] sm:$0xff]   ;;  %s3396_s27 = sshll.u32 %s4038_s16, 5 }
  0x1c   : > { %v3810_v14 = vld [vmem:[%s5074_s1 + $0x20] sm:$0xff]   ;;  %v3814_v18 = vld [vmem:[%s5074_s1 + $0x18] sm:$0xff]   ;;  %v3818_v22 = vld [vmem:[%s5074_s1 + $0x10] sm:$0xff]   ;;  %s3001_s15 = sadd.s32 %s3400_s24, %s3396_s27  ;;  %s4052_s20 = smov [#allocation3]  }
  0x1d   : > { %3404 = vmatpush3.bf16.msra.mxu0 %v3802_v6  ;;  %v3811_v15 = vld [vmem:[%s5074_s1 + $0xa0] sm:$0xff]   ;;  %v3815_v19 = vld [vmem:[%s5074_s1 + $0x98] sm:$0xff]   ;;  %v3819_v23 = vld [vmem:[%s5074_s1 + $0x90] sm:$0xff]   ;;  %s194_s9 = sadd.s32 %s3722_s28, %s3721_s5  ;;  %s185_s28 = sand.u32 1, %s4026_s13  }
  0x1e   : > { %3468 = vmatpush3.bf16.msra.mxu1 %v3803_v7  ;;  %3405 = vmatprep.subr.bf16.mxu0 %v3804_v8  ;;  %v3820_v24 = vld [vmem:[%s5074_s1 + $0x48] sm:$0xff]   ;;  %s3095_s11 = sshll.u32 %s194_s9, 2  ;;  %v3824_v28 = vld [vmem:[%s5074_s1 + $0x40] sm:$0xff]   ;;  %v3834_v40 = vld [vmem:[%s5074_s1 + $0x178] sm:$0xff]   ;;  %s3094_s5 = sshll.u32 %s185_s28, 7 }
  0x1f   : > { %3469 = vmatprep.subr.bf16.mxu1 %v3805_v9  ;;  %v3821_v25 = vld [vmem:[%s5074_s1 + $0xc8] sm:$0xff]   ;;  %v3825_v29 = vld [vmem:[%s5074_s1 + $0xc0] sm:$0xff]   ;;  %s4243_s4 = scalar_lea.vmem %s5073_s0, %s3095_s11  ;;  %vm4264_vm4 = vmor %vm530_vm0, %vm531_vm1  ;;  %s4956_s6 = scalar_lea.vmem [#allocation3], %s3094_s5 }
  0x20   : > { %v3822_v26 = vld [vmem:[%s5074_s1 + $0x8] sm:$0xff]   ;;  %v3826_v30 = vld [vmem:[%s5074_s1] sm:$0xff]   ;;  %vm4270_vm5 = vmor %vm255_vm2, %vm256_vm3  ;;  %s3397_s16 = sshll.u32 %s3001_s15, 7  ;;  %s3004_s29 = sshll.u32 %s4956_s6, 4  ;;  %s5016_s29 = int_to_ptr.vmem [resolvable:$true] %s3004_s29 }
  0x21   : > { %3406 = vmatpush3.bf16.msra.mxu0 %v3806_v10  ;;  %v3823_v27 = vld [vmem:[%s5074_s1 + $0x88] sm:$0xff]   ;;  %v3827_v31 = vld [vmem:[%s5074_s1 + $0x80] sm:$0xff]   ;;  %v3105_v58 = vld [vmem:[%s4243_s4 + $0x10] sm:$0xf]  ;;  %s5014_s8 = scalar_lea.hbm %s5076_s3, %s3397_s16  ;;  %s5022_s10 = scalar_lea.sflag [#allocation4], %s185_s28 }
  0x22   : > { %3470 = vmatpush3.bf16.msra.mxu1 %v3807_v11  ;;  %3407 = vmatprep.subr.bf16.mxu0 %v3808_v12  ;;  %v199_v32 = vld [vmem:[%s4243_s4] sm:$0xf]  ;;  %v200_v33 = vld [vmem:[%s4243_s4 + $0x4] sm:$0xf]  ;;  %v233_v36 = vld [vmem:[%s4243_s4 + $0x8] sm:$0x1] }
  0x23   : > { %3471 = vmatprep.subr.bf16.mxu1 %v3809_v13  ;;  %v231_v34 = vld [vmem:[%s4243_s4] sm:$0xf]  ;;  %215 = vst [vmem:[#allocation2] sm:$0xf] %v199_v32  ;;  %216 = vst [vmem:[#allocation2 + $0x24] sm:$0xf] %v200_v33 }
  0x24   : > { %v232_v35 = vld [vmem:[%s4243_s4 + $0x4] sm:$0xf]  ;;  %v259_v37 = vshrl.u32 %v231_v34, 16  ;;  %v262_v38 = vshll.u32 %v231_v34, 16  ;;  %v278_v42 = vshll.u32 %v233_v36, 16  ;;  %v3835_v62 = vld [vmem:[%s5074_s1 + $0x1f8] sm:$0xff]  }
  0x25   : > { %3408 = vmatpush3.bf16.msra.mxu0 %v3810_v14  ;;  %v268_v39 = vshll.u32 %v232_v35, 16  ;;  %v272_v41 = vshrl.u32 %v232_v35, 16  ;;  %v482_v43 = vld [vmem:[%s4243_s4] sm:$0xe]  ;;  %v483_v44 = vld [vmem:[%s4243_s4 + $0x4] sm:$0xf] }
  0x26   : > { %3472 = vmatpush3.bf16.msra.mxu1 %v3811_v15  ;;  %3409 = vmatprep.subr.bf16.mxu0 %v3812_v16  ;;  %v261_v45 = vrot.slane %v259_v37, 4  ;;  %v264_v46 = vrot.slane %v262_v38, 5  ;;  %v484_v48 = vld [vmem:[%s4243_s4 + $0x8] sm:$0x1]  ;;  %v3096_v50 = vrot.slane %v482_v43, 9  ;;  %v280_v53 = vrot.slane %v278_v42, 5 }
  0x27   : > { %3473 = vmatprep.subr.bf16.mxu1 %v3813_v17  ;;  %v270_v47 = vrot.slane %v268_v39, 5  ;;  %v274_v52 = vrot.slane %v272_v41, 4  ;;  %v535_v54 = vrot.slane %v483_v44, 5  ;;  %v538_v55 = vrot.slane %v484_v48, 5  ;;  %v3104_v56 = vld [vmem:[%s4243_s4 + $0xc] sm:$0xf] }
  0x28   : > { %v265_v57 = vor.u32 %v264_v46, %v261_v45  ;;  %638 = vst [vmem:[#allocation2 + $0xc] sm:$0xf] %v3104_v56  ;;  %639 = vst [vmem:[#allocation2 + $0x30] sm:$0xf] %v3105_v58  ;;  %v201_v3 = vld [vmem:[%s4243_s4 + $0xc] sm:$0xf] }
  0x29   : > { %3410 = vmatpush3.bf16.msra.mxu0 %v3814_v18  ;;  %v275_v59 = vor.u32 %v274_v52, %v270_v47  ;;  %v536_v60 = vsel %vm4264_vm4, %v3096_v50, %v535_v54  ;;  %v537_v61 = vrot.slane %v535_v54, 4  ;;  %v202_v4 = vld [vmem:[%s4243_s4 + $0x10] sm:$0xf]  ;;  %v234_v5 = vld [vmem:[%s4243_s4 + $0xc] sm:$0xf]  ;;  %v3836_v32 = vld [vmem:[%s5074_s1 + $0x138] sm:$0xff]  }
  0x2a   : > { %3474 = vmatpush3.bf16.msra.mxu1 %v3815_v19  ;;  %3411 = vmatprep.subr.bf16.mxu0 %v3816_v20  ;;  %v266_v63 = vrot.slane %v265_v57, 4  ;;  %605 = vst [vmem:[#allocation2 + $0x8] sm:$0xf] %v536_v60  ;;  %217 = vst [vmem:[#allocation2 + $0x48] sm:$0xf] %v201_v3  ;;  %v283_v9 = vshrl.u32 %v234_v5, 16 }
  0x2b   : > { %3475 = vmatprep.subr.bf16.mxu1 %v3817_v21  ;;  %v276_v0 = vrot.slane %v275_v59, 4  ;;  %v539_v1 = vsel %vm4264_vm4, %v537_v61, %v538_v55  ;;  %218 = vst [vmem:[#allocation2 + $0x6c] sm:$0xf] %v202_v4  ;;  %v235_v7 = vld [vmem:[%s4243_s4 + $0x10] sm:$0xf]  ;;  %v286_v10 = vshll.u32 %v234_v5, 16 }
  0x2c   : > { %v271_v2 = vsel %vm4270_vm5, %v266_v63, %v270_v47  ;;  %606 = vst [vmem:[#allocation2 + $0x2c] sm:$0xf] %v539_v1  ;;  %v236_v8 = vld [vmem:[%s4243_s4 + $0x14] sm:$0x1]  ;;  %v292_v11 = vshll.u32 %v235_v7, 16  ;;  %v296_v12 = vshrl.u32 %v235_v7, 16 }
  0x2d   : > { %3412 = vmatpush3.bf16.msra.mxu0 %v3818_v22  ;;  %v281_v6 = vsel %vm4270_vm5, %v276_v0, %v280_v53  ;;  %466 = vst [vmem:[#allocation2 + $0x4] sm:$0xf] %v271_v2  ;;  %v302_v13 = vshll.u32 %v236_v8, 16  ;;  %v485_v14 = vld [vmem:[%s4243_s4 + $0xc] sm:$0xe]  ;;  %v285_v15 = vrot.slane %v283_v9, 4 }
  0x2e   : > { %3476 = vmatpush3.bf16.msra.mxu1 %v3819_v23  ;;  %3413 = vmatprep.subr.bf16.mxu0 %v3820_v24  ;;  %467 = vst [vmem:[#allocation2 + $0x28] sm:$0xf] %v281_v6  ;;  %v288_v16 = vrot.slane %v286_v10, 5  ;;  %v486_v17 = vld [vmem:[%s4243_s4 + $0x10] sm:$0xf]  ;;  %v294_v19 = vrot.slane %v292_v11, 5 }
  0x2f   : > { %3477 = vmatprep.subr.bf16.mxu1 %v3821_v25  ;;  %v487_v18 = vld [vmem:[%s4243_s4 + $0x14] sm:$0x1]  ;;  %v298_v20 = vrot.slane %v296_v12, 4  ;;  %v3097_v21 = vrot.slane %v485_v14, 9  ;;  %v3106_v22 = vld [vmem:[%s4243_s4 + $0x18] sm:$0xf] }
  0x30   : > { %v3837_v23 = vld [vmem:[%s5074_s1 + $0x1b8] sm:$0xff]   ;;  %v289_v24 = vor.u32 %v288_v16, %v285_v15  ;;  %v304_v25 = vrot.slane %v302_v13, 5  ;;  %640 = vst [vmem:[#allocation2 + $0x54] sm:$0xf] %v3106_v22  ;;  %v3843_v37 = vld [vmem:[%s5074_s1 + $0x170] sm:$0xff]   ;;  %v3852_v60 = vld [vmem:[%s5074_s1 + $0x168] sm:$0xff]  }
  0x31   : > { %3414 = vmatpush3.bf16.msra.mxu0 %v3822_v26  ;;  %v542_v26 = vrot.slane %v486_v17, 5  ;;  %v3844_v38 = vld [vmem:[%s5074_s1 + $0x1f0] sm:$0xff]   ;;  %v3828_v39 = vld [vmem:[#allocation2] ss:$36 sps:$4 sm:$0xff]   ;;  %v203_v46 = vld [vmem:[%s4243_s4 + $0x18] sm:$0xf] }
  0x32   : > { %3478 = vmatpush3.bf16.msra.mxu1 %v3823_v27  ;;  %3415 = vmatprep.subr.bf16.mxu0 %v3824_v28  ;;  %v545_v27 = vrot.slane %v487_v18, 5  ;;  %v3107_v28 = vld [vmem:[%s4243_s4 + $0x1c] sm:$0xf]  ;;  %v290_v33 = vrot.slane %v289_v24, 4  ;;  %v3845_v44 = vld [vmem:[%s5074_s1 + $0x130] sm:$0xff]   ;;  %v3853_v1 = vld [vmem:[%s5074_s1 + $0x1e8] sm:$0xff]  }
  0x33   : > { %3479 = vmatprep.subr.bf16.mxu1 %v3825_v29  ;;  %v299_v29 = vor.u32 %v298_v20, %v294_v19  ;;  %641 = vst [vmem:[#allocation2 + $0x78] sm:$0xf] %v3107_v28  ;;  %v543_v34 = vsel %vm4264_vm4, %v3097_v21, %v542_v26  ;;  %v544_v36 = vrot.slane %v542_v26, 4  ;;  %v3846_v45 = vld [vmem:[%s5074_s1 + $0x1b0] sm:$0xff]   ;;  %v204_v47 = vld [vmem:[%s4243_s4 + $0x1c] sm:$0xf] }
  0x34   : > { %607 = vst [vmem:[#allocation2 + $0x50] sm:$0xf] %v543_v34  ;;  %v295_v41 = vsel %vm4270_vm5, %v290_v33, %v294_v19  ;;  %219 = vst [vmem:[#allocation2 + $0x90] sm:$0xf] %v203_v46  ;;  %v237_v48 = vld [vmem:[%s4243_s4 + $0x18] sm:$0xf] }
  0x35   : > { %3416 = vmatpush3.bf16.msra.mxu0 %v3826_v30  ;;  %v3831_v30 = vld [vmem:[#allocation2 + $0x8] ss:$36 sps:$4 sm:$0xff]   ;;  %v300_v35 = vrot.slane %v299_v29, 4  ;;  %468 = vst [vmem:[#allocation2 + $0x4c] sm:$0xf] %v295_v41  ;;  %v546_v43 = vsel %vm4264_vm4, %v544_v36, %v545_v27  ;;  %v307_v53 = vshrl.u32 %v237_v48, 16 }
  0x36   : > { %3480 = vmatpush3.bf16.msra.mxu1 %v3827_v31  ;;  %3529 = vmatprep.subr.bf16.mxu0 %v3834_v40  ;;  %v3833_v31 = vld [vmem:[#allocation2 + $0xc] ss:$36 sps:$4 sm:$0xff]   ;;  %v3830_v40 = vld [vmem:[#allocation2 + $0x4] ss:$36 sps:$4 sm:$0xff]   ;;  %608 = vst [vmem:[#allocation2 + $0x74] sm:$0xf] %v546_v43 }
  0x37   : > { %3593 = vmatprep.subr.bf16.mxu1 %v3835_v62  ;;  %2615 = vmatprep.mubr.bf16.mxu1 %v3833_v31  ;;  %v305_v42 = vsel %vm4270_vm5, %v300_v35, %v304_v25  ;;  %v238_v50 = vld [vmem:[%s4243_s4 + $0x1c] sm:$0xf]  ;;  %220 = vst [vmem:[#allocation2 + $0xb4] sm:$0xf] %v204_v47  ;;  %v239_v52 = vld [vmem:[%s4243_s4 + $0x20] sm:$0x1] }
  0x38   : > { %2518 = vmatprep.mubr.bf16.mxu0 %v3830_v40  ;;  %469 = vst [vmem:[#allocation2 + $0x70] sm:$0xf] %v305_v42  ;;  %v310_v54 = vshll.u32 %v237_v48, 16  ;;  %v316_v55 = vshll.u32 %v238_v50, 16  ;;  %v320_v56 = vshrl.u32 %v238_v50, 16  ;;  %v326_v57 = vshll.u32 %v239_v52, 16 }
  0x39   : > { %2616 = vmatmul.mubr.bf16.vlgmr.msra.gmra.mxu1 %v3831_v30  ;;  %2519 = vmatmul.mubr.bf16.vlgmr.msra.gmra.mxu0 %v3828_v39  ;;  %v488_v58 = vld [vmem:[%s4243_s4 + $0x18] sm:$0xe]  ;;  %v489_v59 = vld [vmem:[%s4243_s4 + $0x1c] sm:$0xf]  ;;  %v309_v61 = vrot.slane %v307_v53, 4  ;;  %v3854_v6 = vld [vmem:[%s5074_s1 + $0x128] sm:$0xff]  }
  0x3a   : > { %3594 = vmatpush3.bf16.msra.mxu1 %v3837_v23  ;;  %3530 = vmatpush3.bf16.msra.mxu0 %v3836_v32  ;;  %v312_v62 = vrot.slane %v310_v54, 5  ;;  %v318_v63 = vrot.slane %v316_v55, 5  ;;  %v322_v0 = vrot.slane %v320_v56, 4  ;;  %v328_v2 = vrot.slane %v326_v57, 5  ;;  %v490_v3 = vld [vmem:[%s4243_s4 + $0x20] sm:$0x1] }
  0x3b   : > { %3595 = vmatprep.subr.bf16.mxu1 %v3844_v38  ;;  %3531 = vmatprep.subr.bf16.mxu0 %v3843_v37  ;;  %v3098_v4 = vrot.slane %v488_v58, 9  ;;  %v549_v5 = vrot.slane %v489_v59, 5  ;;  %v552_v10 = vrot.slane %v490_v3, 5  ;;  %v3108_v11 = vld [vmem:[%s4243_s4 + $0x24] sm:$0xf]  ;;  %v3855_v25 = vld [vmem:[%s5074_s1 + $0x1a8] sm:$0xff]  }
  0x3c   : > { %v1465_v7 = vld [vmem:[#allocation2 + $0x48] sm:$0xff]  ;;  %v313_v8 = vor.u32 %v312_v62, %v309_v61  ;;  %v323_v9 = vor.u32 %v322_v0, %v318_v63  ;;  %642 = vst [vmem:[#allocation2 + $0x9c] sm:$0xf] %v3108_v11  ;;  %v3840_v17 = vld [vmem:[#allocation2 + $0x54] ss:$36 sps:$4 sm:$0xff]   ;;  %v3861_v37 = vld [vmem:[%s5074_s1 + $0x160] sm:$0xff]  }
  0x3d   : > { %v3109_v12 = vld [vmem:[%s4243_s4 + $0x28] sm:$0xf]  ;;  %v550_v15 = vsel %vm4264_vm4, %v3098_v4, %v549_v5  ;;  %v551_v16 = vrot.slane %v549_v5, 4  ;;  %v3842_v19 = vld [vmem:[#allocation2 + $0x50] ss:$36 sps:$4 sm:$0xff]   ;;  %2623 = vmatprep.mubr.bf16.mxu1 %v3840_v17  ;;  %v3864_v5 = vld [vmem:[%s5074_s1 + $0x1a0] sm:$0xff]  }
  0x3e   : > { %3596 = vmatpush3.bf16.msra.mxu1 %v3846_v45  ;;  %3532 = vmatpush3.bf16.msra.mxu0 %v3845_v44  ;;  %643 = vst [vmem:[#allocation2 + $0xc0] sm:$0xf] %v3109_v12  ;;  %v314_v20 = vrot.slane %v313_v8, 4  ;;  %v324_v21 = vrot.slane %v323_v9, 4  ;;  %609 = vst [vmem:[#allocation2 + $0x98] sm:$0xf] %v550_v15 }
  0x3f   : > { %3597 = vmatprep.subr.bf16.mxu1 %v3853_v1  ;;  %v1470_v13 = vld [vmem:[#allocation2 + $0x6c] sm:$0xff]  ;;  %3533 = vmatprep.subr.bf16.mxu0 %v3852_v60  ;;  %v553_v22 = vsel %vm4264_vm4, %v551_v16, %v552_v10  ;;  %v205_v26 = vld [vmem:[%s4243_s4 + $0x24] sm:$0xf]  ;;  %v206_v27 = vld [vmem:[%s4243_s4 + $0x28] sm:$0xf]  ;;  %s3958_s11 = scalar_lea.vmem %s5016_s29, 2048 }
  0x40   : > { %v3838_v14 = vld [vmem:[#allocation2 + $0x4c] ss:$36 sps:$4 sm:$0xff]   ;;  %v3258_v18 = vcombine.low %v1465_v7, %v1470_v13  ;;  %v319_v23 = vsel %vm4270_vm5, %v314_v20, %v318_v63  ;;  %v329_v24 = vsel %vm4270_vm5, %v324_v21, %v328_v2  ;;  %610 = vst [vmem:[#allocation2 + $0xbc] sm:$0xf] %v553_v22  ;;  %v240_v28 = vld [vmem:[%s4243_s4 + $0x24] sm:$0xf]  ;;  %p3959_p0 = scmp.ne.s32.totalorder %s5016_s29, %s3958_s11 }
  0x41   : > { %2526 = vmatprep.mubr.bf16.mxu0 %v3838_v14  ;;  %2624 = vmatmul.mubr.bf16.gmra.mxu1 %v3842_v19  ;;  %470 = vst [vmem:[#allocation2 + $0x94] sm:$0xf] %v319_v23  ;;  %471 = vst [vmem:[#allocation2 + $0xb8] sm:$0xf] %v329_v24  ;;  %v241_v29 = vld [vmem:[%s4243_s4 + $0x28] sm:$0xf] }
  0x42   : > { %2527 = vmatmul.mubr.bf16.gmra.mxu0 %v3258_v18  ;;  %3598 = vmatpush3.bf16.msra.mxu1 %v3855_v25  ;;  %221 = vst [vmem:[#allocation2 + $0xd8] sm:$0xf] %v205_v26  ;;  %222 = vst [vmem:[#allocation2 + $0xfc] sm:$0xf] %v206_v27  ;;  %v242_v30 = vld [vmem:[%s4243_s4 + $0x2c] sm:$0x1]  ;;  %p3960_p1 = pnand %p3959_p0, %p4126_p3 }
  0x43   : > { %3534 = vmatpush3.bf16.msra.mxu0 %v3854_v6  ;;  %v331_v31 = vshrl.u32 %v240_v28, 16  ;;  %v334_v32 = vshll.u32 %v240_v28, 16  ;;  %v340_v33 = vshll.u32 %v241_v29, 16  ;;  %v344_v34 = vshrl.u32 %v241_v29, 16  ;;  %v491_v36 = vld [vmem:[%s4243_s4 + $0x24] sm:$0xe] }
  0x44   : > { %v350_v35 = vshll.u32 %v242_v30, 16  ;;  %v492_v40 = vld [vmem:[%s4243_s4 + $0x28] sm:$0xf]  ;;  %v3099_v41 = vrot.slane %v491_v36, 9  ;;  %v493_v44 = vld [vmem:[%s4243_s4 + $0x2c] sm:$0x1]  ;;  %3535 = vmatprep.subr.bf16.mxu0 %v3861_v37  ;;  %p3961_p2 = pneg %p3960_p1 }
  0x45   : > { %v333_v38 = vrot.slane %v331_v31, 4  ;;  %v336_v39 = vrot.slane %v334_v32, 5  ;;  %v342_v42 = vrot.slane %v340_v33, 5  ;;  %v346_v43 = vrot.slane %v344_v34, 4  ;;  %v3849_v46 = vld [vmem:[#allocation2 + $0x9c] ss:$36 sps:$4 sm:$0xff]  }
  0x46   : > { %v556_v45 = vrot.slane %v492_v40, 5  ;;  %v559_v50 = vrot.slane %v493_v44, 5  ;;  %v352_v56 = vrot.slane %v350_v35, 5  ;;  %2631 = vmatprep.mubr.bf16.mxu1 %v3849_v46  ;;  %v3110_v61 = vld [vmem:[%s4243_s4 + $0x30] sm:$0xf]  ;;  %v3862_v63 = vld [vmem:[%s5074_s1 + $0x1e0] sm:$0xff]  }
  0x47   : > { %v3851_v47 = vld [vmem:[#allocation2 + $0x98] ss:$36 sps:$4 sm:$0xff]   ;;  %v337_v48 = vor.u32 %v336_v39, %v333_v38  ;;  %v347_v55 = vor.u32 %v346_v43, %v342_v42  ;;  %v3111_v62 = vld [vmem:[%s4243_s4 + $0x34] sm:$0xf]  ;;  %644 = vst [vmem:[#allocation2 + $0xe4] sm:$0xf] %v3110_v61  ;;  %3599 = vmatprep.subr.bf16.mxu1 %v3862_v63 }
  0x48   : > { %v1475_v52 = vld [vmem:[#allocation2 + $0x90] sm:$0xff]  ;;  %v557_v57 = vsel %vm4264_vm4, %v3099_v41, %v556_v45  ;;  %v558_v58 = vrot.slane %v556_v45, 4  ;;  %645 = vst [vmem:[#allocation2 + $0x108] sm:$0xf] %v3111_v62  ;;  %v3863_v2 = vld [vmem:[%s5074_s1 + $0x120] sm:$0xff]   ;;  %3600 = vmatpush3.bf16.msra.mxu1 %v3864_v5  ;;  %v3870_v24 = vld [vmem:[%s5074_s1 + $0x158] sm:$0xff]  }
  0x49   : > { %v1480_v53 = vld [vmem:[#allocation2 + $0xb4] sm:$0xff]  ;;  %v338_v60 = vrot.slane %v337_v48, 4  ;;  %611 = vst [vmem:[#allocation2 + $0xe0] sm:$0xf] %v557_v57  ;;  %2632 = vmatmul.mubr.bf16.gmra.mxu1 %v3851_v47  ;;  %v348_v0 = vrot.slane %v347_v55, 4  ;;  %3536 = vmatpush3.bf16.msra.mxu0 %v3863_v2 }
  0x4a   : > { %v3847_v54 = vld [vmem:[#allocation2 + $0x94] ss:$36 sps:$4 sm:$0xff]   ;;  %v3267_v59 = vcombine.low %v1475_v52, %v1480_v53  ;;  %v560_v1 = vsel %vm4264_vm4, %v558_v58, %v559_v50  ;;  %v207_v6 = vld [vmem:[%s4243_s4 + $0x30] sm:$0xf]  ;;  %v3112_v32 = vld [vmem:[%s4243_s4 + $0x3c] sm:$0xf]  ;;  %3537 = vmatprep.subr.bf16.mxu0 %v3870_v24 }
  0x4b   : > { %2534 = vmatprep.mubr.bf16.mxu0 %v3847_v54  ;;  %v343_v3 = vsel %vm4270_vm5, %v338_v60, %v342_v42  ;;  %612 = vst [vmem:[#allocation2 + $0x104] sm:$0xf] %v560_v1  ;;  %v353_v4 = vsel %vm4270_vm5, %v348_v0, %v352_v56  ;;  %v208_v7 = vld [vmem:[%s4243_s4 + $0x34] sm:$0xf]  ;;  %223 = vst [vmem:[#allocation2 + $0x120] sm:$0xf] %v207_v6 }
  0x4c   : > { %2535 = vmatmul.mubr.bf16.gmra.mxu0 %v3267_v59  ;;  %472 = vst [vmem:[#allocation2 + $0xdc] sm:$0xf] %v343_v3  ;;  %473 = vst [vmem:[#allocation2 + $0x100] sm:$0xf] %v353_v4  ;;  %v243_v8 = vld [vmem:[%s4243_s4 + $0x30] sm:$0xf] }
  0x4d   : > { %224 = vst [vmem:[#allocation2 + $0x144] sm:$0xf] %v208_v7  ;;  %v244_v9 = vld [vmem:[%s4243_s4 + $0x34] sm:$0xf]  ;;  %v245_v10 = vld [vmem:[%s4243_s4 + $0x38] sm:$0x1] }
  0x4e   : > { %v355_v11 = vshrl.u32 %v243_v8, 16  ;;  %v358_v12 = vshll.u32 %v243_v8, 16  ;;  %v364_v13 = vshll.u32 %v244_v9, 16  ;;  %v368_v14 = vshrl.u32 %v244_v9, 16  ;;  %v494_v15 = vld [vmem:[%s4243_s4 + $0x30] sm:$0xe] }
  0x4f   : > { %v374_v16 = vshll.u32 %v245_v10, 16  ;;  %v495_v17 = vld [vmem:[%s4243_s4 + $0x34] sm:$0xf]  ;;  %v496_v18 = vld [vmem:[%s4243_s4 + $0x38] sm:$0x1]  ;;  %v3100_v19 = vrot.slane %v494_v15, 9 }
  0x50   : > { %v357_v20 = vrot.slane %v355_v11, 4  ;;  %v360_v21 = vrot.slane %v358_v12, 5  ;;  %v366_v22 = vrot.slane %v364_v13, 5  ;;  %v370_v23 = vrot.slane %v368_v14, 4  ;;  %v3858_v25 = vld [vmem:[#allocation2 + $0xe4] ss:$36 sps:$4 sm:$0xff]  }
  0x51   : > { %v376_v30 = vrot.slane %v374_v16, 5  ;;  %v563_v31 = vrot.slane %v495_v17, 5  ;;  %v3871_v33 = vld [vmem:[%s5074_s1 + $0x1d8] sm:$0xff]   ;;  %2639 = vmatprep.mubr.bf16.mxu1 %v3858_v25  ;;  %v566_v36 = vrot.slane %v496_v18, 5  ;;  %v3113_v37 = vld [vmem:[%s4243_s4 + $0x40] sm:$0xf] }
  0x52   : > { %v3860_v26 = vld [vmem:[#allocation2 + $0xe0] ss:$36 sps:$4 sm:$0xff]   ;;  %v361_v28 = vor.u32 %v360_v21, %v357_v20  ;;  %v371_v29 = vor.u32 %v370_v23, %v366_v22  ;;  %646 = vst [vmem:[#allocation2 + $0x12c] sm:$0xf] %v3112_v32  ;;  %647 = vst [vmem:[#allocation2 + $0x150] sm:$0xf] %v3113_v37  ;;  %3601 = vmatprep.subr.bf16.mxu1 %v3871_v33 }
  0x53   : > { %v1485_v27 = vld [vmem:[#allocation2 + $0xd8] sm:$0xff]  ;;  %2640 = vmatmul.mubr.bf16.gmra.mxu1 %v3860_v26  ;;  %v564_v41 = vsel %vm4264_vm4, %v3100_v19, %v563_v31  ;;  %v565_v42 = vrot.slane %v563_v31, 4  ;;  %v210_v50 = vld [vmem:[%s4243_s4 + $0x40] sm:$0xf]  ;;  %v248_v54 = vld [vmem:[%s4243_s4 + $0x44] sm:$0x1] }
  0x54   : > { %v1490_v34 = vld [vmem:[#allocation2 + $0xfc] sm:$0xff]  ;;  %v362_v39 = vrot.slane %v361_v28, 4  ;;  %v372_v40 = vrot.slane %v371_v29, 4  ;;  %613 = vst [vmem:[#allocation2 + $0x128] sm:$0xf] %v564_v41  ;;  %v398_v59 = vshll.u32 %v248_v54, 16 }
  0x55   : > { %v3856_v35 = vld [vmem:[#allocation2 + $0xdc] ss:$36 sps:$4 sm:$0xff]   ;;  %v3276_v38 = vcombine.low %v1485_v27, %v1490_v34  ;;  %v567_v46 = vsel %vm4264_vm4, %v565_v42, %v566_v36  ;;  %226 = vst [vmem:[#allocation2 + $0x18c] sm:$0xf] %v210_v50  ;;  %v3879_v62 = vld [vmem:[%s5074_s1 + $0x150] sm:$0xff]  }
  0x56   : > { %2542 = vmatprep.mubr.bf16.mxu0 %v3856_v35  ;;  %v3872_v43 = vld [vmem:[%s5074_s1 + $0x118] sm:$0xff]   ;;  %v367_v44 = vsel %vm4270_vm5, %v362_v39, %v366_v22  ;;  %v377_v45 = vsel %vm4270_vm5, %v372_v40, %v376_v30  ;;  %614 = vst [vmem:[#allocation2 + $0x14c] sm:$0xf] %v567_v46  ;;  %v247_v53 = vld [vmem:[%s4243_s4 + $0x40] sm:$0xf]  ;;  %v3880_v7 = vld [vmem:[%s5074_s1 + $0x1d0] sm:$0xff]  }
  0x57   : > { %2543 = vmatmul.mubr.bf16.gmra.mxu0 %v3276_v38  ;;  %474 = vst [vmem:[#allocation2 + $0x124] sm:$0xf] %v367_v44  ;;  %475 = vst [vmem:[#allocation2 + $0x148] sm:$0xf] %v377_v45  ;;  %v3873_v47 = vld [vmem:[%s5074_s1 + $0x198] sm:$0xff]   ;;  %v388_v57 = vshll.u32 %v247_v53, 16 }
  0x58   : > { %3538 = vmatpush3.bf16.msra.mxu0 %v3872_v43  ;;  %v209_v48 = vld [vmem:[%s4243_s4 + $0x3c] sm:$0xf]  ;;  %3602 = vmatpush3.bf16.msra.mxu1 %v3873_v47  ;;  %v392_v58 = vshrl.u32 %v247_v53, 16  ;;  %v498_v61 = vld [vmem:[%s4243_s4 + $0x40] sm:$0xf]  ;;  %v400_v15 = vrot.slane %v398_v59, 5 }
  0x59   : > { %225 = vst [vmem:[#allocation2 + $0x168] sm:$0xf] %v209_v48  ;;  %v246_v52 = vld [vmem:[%s4243_s4 + $0x3c] sm:$0xf]  ;;  %v390_v1 = vrot.slane %v388_v57, 5  ;;  %v570_v5 = vrot.slane %v498_v61, 5  ;;  %3539 = vmatprep.subr.bf16.mxu0 %v3879_v62  ;;  %3603 = vmatprep.subr.bf16.mxu1 %v3880_v7 }
  0x5a   : > { %v379_v55 = vshrl.u32 %v246_v52, 16  ;;  %v382_v56 = vshll.u32 %v246_v52, 16  ;;  %v497_v60 = vld [vmem:[%s4243_s4 + $0x3c] sm:$0xe]  ;;  %v394_v2 = vrot.slane %v392_v58, 4  ;;  %v3881_v24 = vld [vmem:[%s5074_s1 + $0x110] sm:$0xff]  }
  0x5b   : > { %v499_v3 = vld [vmem:[%s4243_s4 + $0x44] sm:$0x1]  ;;  %v3101_v4 = vrot.slane %v497_v60, 9  ;;  %v3114_v10 = vld [vmem:[%s4243_s4 + $0x48] sm:$0xf]  ;;  %v572_v17 = vrot.slane %v570_v5, 4 }
  0x5c   : > { %v381_v63 = vrot.slane %v379_v55, 4  ;;  %v384_v0 = vrot.slane %v382_v56, 5  ;;  %v573_v6 = vrot.slane %v499_v3, 5  ;;  %v395_v9 = vor.u32 %v394_v2, %v390_v1  ;;  %v3115_v11 = vld [vmem:[%s4243_s4 + $0x4c] sm:$0xf]  ;;  %3540 = vmatpush3.bf16.msra.mxu0 %v3881_v24  ;;  %v3882_v27 = vld [vmem:[%s5074_s1 + $0x190] sm:$0xff]  }
  0x5d   : > { %v571_v16 = vsel %vm4264_vm4, %v3101_v4, %v570_v5  ;;  %648 = vst [vmem:[#allocation2 + $0x174] sm:$0xf] %v3114_v10  ;;  %649 = vst [vmem:[#allocation2 + $0x198] sm:$0xf] %v3115_v11  ;;  %v3867_v18 = vld [vmem:[#allocation2 + $0x12c] ss:$36 sps:$4 sm:$0xff]   ;;  %3604 = vmatpush3.bf16.msra.mxu1 %v3882_v27 }
  0x5e   : > { %v385_v8 = vor.u32 %v384_v0, %v381_v63  ;;  %v1495_v12 = vld [vmem:[#allocation2 + $0x120] sm:$0xff]  ;;  %v3869_v20 = vld [vmem:[#allocation2 + $0x128] ss:$36 sps:$4 sm:$0xff]   ;;  %615 = vst [vmem:[#allocation2 + $0x170] sm:$0xf] %v571_v16  ;;  %v396_v22 = vrot.slane %v395_v9, 4  ;;  %v574_v23 = vsel %vm4264_vm4, %v572_v17, %v573_v6  ;;  %2647 = vmatprep.mubr.bf16.mxu1 %v3867_v18 }
  0x5f   : > { %v1500_v13 = vld [vmem:[#allocation2 + $0x144] sm:$0xff]  ;;  %616 = vst [vmem:[#allocation2 + $0x194] sm:$0xf] %v574_v23  ;;  %2648 = vmatmul.mubr.bf16.gmra.mxu1 %v3869_v20  ;;  %v212_v29 = vld [vmem:[%s4243_s4 + $0x4c] sm:$0xf] }
  0x60   : > { %v3865_v14 = vld [vmem:[#allocation2 + $0x124] ss:$36 sps:$4 sm:$0xff]   ;;  %v3285_v19 = vcombine.low %v1495_v12, %v1500_v13  ;;  %v386_v21 = vrot.slane %v385_v8, 4  ;;  %v401_v26 = vsel %vm4270_vm5, %v396_v22, %v400_v15  ;;  %228 = vst [vmem:[#allocation2 + $0x1d4] sm:$0xf] %v212_v29 }
  0x61   : > { %2550 = vmatprep.mubr.bf16.mxu0 %v3865_v14  ;;  %477 = vst [vmem:[#allocation2 + $0x190] sm:$0xf] %v401_v26  ;;  %v211_v28 = vld [vmem:[%s4243_s4 + $0x48] sm:$0xf]  ;;  %v250_v31 = vld [vmem:[%s4243_s4 + $0x4c] sm:$0xf] }
  0x62   : > { %2551 = vmatmul.mubr.bf16.gmra.mxu0 %v3285_v19  ;;  %v391_v25 = vsel %vm4270_vm5, %v386_v21, %v390_v1  ;;  %v249_v30 = vld [vmem:[%s4243_s4 + $0x48] sm:$0xf]  ;;  %227 = vst [vmem:[#allocation2 + $0x1b0] sm:$0xf] %v211_v28  ;;  %v251_v32 = vld [vmem:[%s4243_s4 + $0x50] sm:$0x1] }
  0x63   : > { %476 = vst [vmem:[#allocation2 + $0x16c] sm:$0xf] %v391_v25  ;;  %v403_v33 = vshrl.u32 %v249_v30, 16  ;;  %v406_v34 = vshll.u32 %v249_v30, 16  ;;  %v412_v35 = vshll.u32 %v250_v31, 16  ;;  %v416_v36 = vshrl.u32 %v250_v31, 16 }
  0x64   : > { %v422_v37 = vshll.u32 %v251_v32, 16  ;;  %v500_v38 = vld [vmem:[%s4243_s4 + $0x48] sm:$0xe]  ;;  %v501_v42 = vld [vmem:[%s4243_s4 + $0x4c] sm:$0xf] }
  0x65   : > { %v3888_v39 = vld [vmem:[%s5074_s1 + $0x148] sm:$0xff]   ;;  %v405_v40 = vrot.slane %v403_v33, 4  ;;  %v408_v41 = vrot.slane %v406_v34, 5  ;;  %v3102_v43 = vrot.slane %v500_v38, 9  ;;  %v414_v44 = vrot.slane %v412_v35, 5  ;;  %v3897_v35 = vld [vmem:[%s5074_s1 + $0x140] sm:$0xff]  }
  0x66   : > { %v418_v45 = vrot.slane %v416_v36, 4  ;;  %v424_v46 = vrot.slane %v422_v37, 5  ;;  %v502_v47 = vld [vmem:[%s4243_s4 + $0x50] sm:$0x1]  ;;  %v577_v48 = vrot.slane %v501_v42, 5  ;;  %3541 = vmatprep.subr.bf16.mxu0 %v3888_v39  ;;  %v3889_v3 = vld [vmem:[%s5074_s1 + $0x1c8] sm:$0xff]  }
  0x67   : > { %v3876_v50 = vld [vmem:[#allocation2 + $0x174] ss:$36 sps:$4 sm:$0xff]   ;;  %v409_v53 = vor.u32 %v408_v41, %v405_v40  ;;  %v580_v54 = vrot.slane %v502_v47, 5  ;;  %3605 = vmatprep.subr.bf16.mxu1 %v3889_v3  ;;  %v3890_v6 = vld [vmem:[%s5074_s1 + $0x108] sm:$0xff]   ;;  %v254_v12 = vld [vmem:[%s4243_s4 + $0x5c] sm:$0x1] }
  0x68   : > { %v3878_v52 = vld [vmem:[#allocation2 + $0x170] ss:$36 sps:$4 sm:$0xff]   ;;  %v419_v56 = vor.u32 %v418_v45, %v414_v44  ;;  %v578_v57 = vsel %vm4264_vm4, %v3102_v43, %v577_v48  ;;  %v579_v58 = vrot.slane %v577_v48, 4  ;;  %v3117_v60 = vld [vmem:[%s4243_s4 + $0x58] sm:$0xf]  ;;  %2655 = vmatprep.mubr.bf16.mxu1 %v3876_v50  ;;  %v3891_v7 = vld [vmem:[%s5074_s1 + $0x188] sm:$0xff]   ;;  %3542 = vmatpush3.bf16.msra.mxu0 %v3890_v6 }
  0x69   : > { %v3116_v59 = vld [vmem:[%s4243_s4 + $0x54] sm:$0xf]  ;;  %v1510_v61 = vld [vmem:[#allocation2 + $0x18c] sm:$0xff]  ;;  %v410_v63 = vrot.slane %v409_v53, 4  ;;  %617 = vst [vmem:[#allocation2 + $0x1b8] sm:$0xf] %v578_v57  ;;  %2656 = vmatmul.mubr.bf16.gmra.mxu1 %v3878_v52  ;;  %3543 = vmatprep.subr.bf16.mxu0 %v3897_v35 }
  0x6a   : > { %v1505_v55 = vld [vmem:[#allocation2 + $0x168] sm:$0xff]  ;;  %650 = vst [vmem:[#allocation2 + $0x1bc] sm:$0xf] %v3116_v59  ;;  %651 = vst [vmem:[#allocation2 + $0x1e0] sm:$0xf] %v3117_v60  ;;  %v420_v1 = vrot.slane %v419_v56, 4  ;;  %v581_v2 = vsel %vm4264_vm4, %v579_v58, %v580_v54  ;;  %3606 = vmatpush3.bf16.msra.mxu1 %v3891_v7 }
  0x6b   : > { %v3874_v62 = vld [vmem:[#allocation2 + $0x16c] ss:$36 sps:$4 sm:$0xff]   ;;  %v3294_v0 = vcombine.low %v1505_v55, %v1510_v61  ;;  %v415_v4 = vsel %vm4270_vm5, %v410_v63, %v414_v44  ;;  %618 = vst [vmem:[#allocation2 + $0x1dc] sm:$0xf] %v581_v2  ;;  %v213_v8 = vld [vmem:[%s4243_s4 + $0x54] sm:$0xf] }
  0x6c   : > { %2558 = vmatprep.mubr.bf16.mxu0 %v3874_v62  ;;  %v425_v5 = vsel %vm4270_vm5, %v420_v1, %v424_v46  ;;  %478 = vst [vmem:[#allocation2 + $0x1b4] sm:$0xf] %v415_v4  ;;  %v214_v9 = vld [vmem:[%s4243_s4 + $0x58] sm:$0xf]  ;;  %229 = vst [vmem:[#allocation2 + $0x1f8] sm:$0xf] %v213_v8 }
  0x6d   : > { %2559 = vmatmul.mubr.bf16.gmra.mxu0 %v3294_v0  ;;  %479 = vst [vmem:[#allocation2 + $0x1d8] sm:$0xf] %v425_v5  ;;  %230 = vst [vmem:[#allocation2 + $0x21c] sm:$0xf] %v214_v9  ;;  %v252_v10 = vld [vmem:[%s4243_s4 + $0x54] sm:$0xf] }
  0x6e   : > { %v253_v11 = vld [vmem:[%s4243_s4 + $0x58] sm:$0xf]  ;;  %v427_v13 = vshrl.u32 %v252_v10, 16  ;;  %v430_v14 = vshll.u32 %v252_v10, 16  ;;  %v503_v17 = vld [vmem:[%s4243_s4 + $0x54] sm:$0xe] }
  0x6f   : > { %v436_v15 = vshll.u32 %v253_v11, 16  ;;  %v440_v16 = vshrl.u32 %v253_v11, 16  ;;  %v446_v18 = vshll.u32 %v254_v12, 16  ;;  %v504_v19 = vld [vmem:[%s4243_s4 + $0x58] sm:$0xf]  ;;  %v3103_v32 = vrot.slane %v503_v17, 9 }
  0x70   : > { %v505_v20 = vld [vmem:[%s4243_s4 + $0x5c] sm:$0x1]  ;;  %v429_v21 = vrot.slane %v427_v13, 4  ;;  %v432_v22 = vrot.slane %v430_v14, 5  ;;  %v3118_v25 = vld [vmem:[%s4243_s4 + $0x60] sm:$0xf] }
  0x71   : > { %v438_v23 = vrot.slane %v436_v15, 5  ;;  %v442_v24 = vrot.slane %v440_v16, 4  ;;  %v3885_v26 = vld [vmem:[#allocation2 + $0x1bc] ss:$36 sps:$4 sm:$0xff]   ;;  %v448_v28 = vrot.slane %v446_v18, 5  ;;  %v584_v33 = vrot.slane %v504_v19, 5 }
  0x72   : > { %v3887_v27 = vld [vmem:[#allocation2 + $0x1b8] ss:$36 sps:$4 sm:$0xff]   ;;  %652 = vst [vmem:[#allocation2 + $0x204] sm:$0xf] %v3118_v25  ;;  %v433_v30 = vor.u32 %v432_v22, %v429_v21  ;;  %v3119_v34 = vld [vmem:[%s4243_s4 + $0x64] sm:$0xf]  ;;  %2663 = vmatprep.mubr.bf16.mxu1 %v3885_v26 }
  0x73   : > { %v1515_v29 = vld [vmem:[#allocation2 + $0x1b0] sm:$0xff]  ;;  %v443_v31 = vor.u32 %v442_v24, %v438_v23  ;;  %v587_v38 = vrot.slane %v505_v20, 5  ;;  %653 = vst [vmem:[#allocation2 + $0x228] sm:$0xf] %v3119_v34  ;;  %2664 = vmatmul.mubr.bf16.gmra.mxu1 %v3887_v27  ;;  %v585_v42 = vsel %vm4264_vm4, %v3103_v32, %v584_v33  ;;  %v586_v43 = vrot.slane %v584_v33, 4  ;;  %v3898_v44 = vld [vmem:[%s5074_s1 + $0x1c0] sm:$0xff]  }
  0x74   : > { %v1520_v36 = vld [vmem:[#allocation2 + $0x1d4] sm:$0xff]  ;;  %v434_v40 = vrot.slane %v433_v30, 4  ;;  %619 = vst [vmem:[#allocation2 + $0x200] sm:$0xf] %v585_v42  ;;  %v3899_v47 = vld [vmem:[%s5074_s1 + $0x100] sm:$0xff]   ;;  %3607 = vmatprep.subr.bf16.mxu1 %v3898_v44 }
  0x75   : > { %v3883_v37 = vld [vmem:[#allocation2 + $0x1b4] ss:$36 sps:$4 sm:$0xff]   ;;  %v3303_v39 = vcombine.low %v1515_v29, %v1520_v36  ;;  %v444_v41 = vrot.slane %v443_v31, 4  ;;  %v588_v48 = vsel %vm4264_vm4, %v586_v43, %v587_v38  ;;  %v3900_v50 = vld [vmem:[%s5074_s1 + $0x180] sm:$0xff]   ;;  %v3120_v52 = vld [vmem:[%s4243_s4 + $0xc] sm:$0xf]  ;;  %3544 = vmatpush3.bf16.msra.mxu0 %v3899_v47 }
  0x76   : > { %2566 = vmatprep.mubr.bf16.mxu0 %v3883_v37  ;;  %v439_v45 = vsel %vm4270_vm5, %v434_v40, %v438_v23  ;;  %620 = vst [vmem:[#allocation2 + $0x224] sm:$0xf] %v588_v48  ;;  %v3121_v53 = vld [vmem:[%s4243_s4 + $0x10] sm:$0xf]  ;;  %v3122_v54 = vld [vmem:[%s4243_s4 + $0x14] sm:$0x1]  ;;  %3608 = vmatpush3.bf16.msra.mxu1 %v3900_v50 }
  0x77   : > { %2567 = vmatmul.mubr.bf16.gmra.mxu0 %v3303_v39  ;;  %v449_v46 = vsel %vm4270_vm5, %v444_v41, %v448_v28  ;;  %480 = vst [vmem:[#allocation2 + $0x1fc] sm:$0xf] %v439_v45  ;;  %v679_v55 = vshrl.u32 %v3120_v52, 16  ;;  %v682_v56 = vshll.u32 %v3120_v52, 16  ;;  %v688_v57 = vshll.u32 %v3121_v53, 16  ;;  %v4510_v61 = vld [vmem:[%s5074_s1 + $0x238] sm:$0xff]  }
  0x78   : > { %481 = vst [vmem:[#allocation2 + $0x220] sm:$0xf] %v449_v46  ;;  %v692_v58 = vshrl.u32 %v3121_v53, 16  ;;  %v698_v59 = vshll.u32 %v3122_v54, 16  ;;  %v3144_v60 = vld [vmem:[%s4243_s4 + $0xc] sm:$0xe]  ;;  %3673 = vmatprep.subr.bf16.mxu0 %v4510_v61  ;;  %3705 = vmatprep.subr.bf16.mxu1 %v4510_v61 }
  0x79   : > { %v681_v62 = vrot.slane %v679_v55, 4  ;;  %v684_v63 = vrot.slane %v682_v56, 5  ;;  %v3145_v0 = vld [vmem:[%s4243_s4 + $0x10] sm:$0xf]  ;;  %v3146_v1 = vld [vmem:[%s4243_s4 + $0x14] sm:$0x1] }
  0x7a   : > { %v690_v2 = vrot.slane %v688_v57, 5  ;;  %v694_v3 = vrot.slane %v692_v58, 4  ;;  %v3168_v4 = vrot.slane %v3144_v60, 9  ;;  %v3176_v5 = vld [vmem:[%s4243_s4 + $0x18] sm:$0xf]  ;;  %v700_v7 = vrot.slane %v698_v59, 5 }
  0x7b   : > { %v685_v6 = vor.u32 %v684_v63, %v681_v62  ;;  %v952_v8 = vrot.slane %v3145_v0, 5  ;;  %v955_v9 = vrot.slane %v3146_v1, 5  ;;  %v3177_v10 = vld [vmem:[%s4243_s4 + $0x1c] sm:$0xf]  ;;  %1055 = vst [vmem:[#allocation2 + $0x18] sm:$0xf] %v3176_v5 }
  0x7c   : > { %v695_v11 = vor.u32 %v694_v3, %v690_v2  ;;  %1056 = vst [vmem:[#allocation2 + $0x3c] sm:$0xf] %v3177_v10  ;;  %v3192_v12 = vld [vmem:[%s4243_s4 + $0x18] sm:$0xf]  ;;  %v3193_v13 = vld [vmem:[%s4243_s4 + $0x1c] sm:$0xf] }
  0x7d   : > { %v3194_v14 = vld [vmem:[%s4243_s4 + $0x20] sm:$0x1]  ;;  %v686_v18 = vrot.slane %v685_v6, 4  ;;  %v953_v19 = vsel %vm4264_vm4, %v3168_v4, %v952_v8  ;;  %v954_v20 = vrot.slane %v952_v8, 4  ;;  %v3894_v21 = vld [vmem:[#allocation2 + $0x204] ss:$36 sps:$4 sm:$0xff]  }
  0x7e   : > { %v1525_v15 = vld [vmem:[#allocation2 + $0x1f8] sm:$0xff]  ;;  %v3896_v23 = vld [vmem:[#allocation2 + $0x200] ss:$36 sps:$4 sm:$0xff]   ;;  %v696_v24 = vrot.slane %v695_v11, 4  ;;  %1022 = vst [vmem:[#allocation2 + $0x14] sm:$0xf] %v953_v19  ;;  %2671 = vmatprep.mubr.bf16.mxu1 %v3894_v21 }
  0x7f   : > { %v1530_v16 = vld [vmem:[#allocation2 + $0x21c] sm:$0xff]  ;;  %v691_v25 = vsel %vm4270_vm5, %v686_v18, %v690_v2  ;;  %v956_v26 = vsel %vm4264_vm4, %v954_v20, %v955_v9  ;;  %v1096_v27 = vshrl.u32 %v3192_v12, 16  ;;  %v1099_v28 = vshll.u32 %v3192_v12, 16  ;;  %v3123_v33 = vld [vmem:[%s4243_s4 + $0x18] sm:$0xf]  ;;  %2672 = vmatmul.mubr.bf16.gmra.mxu1 %v3896_v23 }
  0x80   : > { %v3892_v17 = vld [vmem:[#allocation2 + $0x1fc] ss:$36 sps:$4 sm:$0xff]   ;;  %v3312_v22 = vcombine.low %v1525_v15, %v1530_v16  ;;  %v701_v29 = vsel %vm4270_vm5, %v696_v24, %v700_v7  ;;  %886 = vst [vmem:[#allocation2 + $0x10] sm:$0xf] %v691_v25  ;;  %1023 = vst [vmem:[#allocation2 + $0x38] sm:$0xf] %v956_v26 }
  0x81   : > { %2574 = vmatprep.mubr.bf16.mxu0 %v3892_v17  ;;  %v1105_v30 = vshll.u32 %v3193_v13, 16  ;;  %v1109_v31 = vshrl.u32 %v3193_v13, 16  ;;  %v1115_v32 = vshll.u32 %v3194_v14, 16  ;;  %887 = vst [vmem:[#allocation2 + $0x34] sm:$0xf] %v701_v29  ;;  %v1098_v34 = vrot.slane %v1096_v27, 4 }
  0x82   : > { %2575 = vmatmul.mubr.bf16.gmra.mxu0 %v3312_v22  ;;  %v1101_v35 = vrot.slane %v1099_v28, 5  ;;  %v3124_v36 = vld [vmem:[%s4243_s4 + $0x1c] sm:$0xf]  ;;  %v3125_v37 = vld [vmem:[%s4243_s4 + $0x20] sm:$0x1]  ;;  %v703_v41 = vshrl.u32 %v3123_v33, 16 }
  0x83   : > { %v1107_v38 = vrot.slane %v1105_v30, 5  ;;  %v1111_v39 = vrot.slane %v1109_v31, 4  ;;  %v1117_v40 = vrot.slane %v1115_v32, 5  ;;  %v3147_v42 = vld [vmem:[%s4243_s4 + $0x18] sm:$0xe]  ;;  %v706_v44 = vshll.u32 %v3123_v33, 16 }
  0x84   : > { %v1102_v43 = vor.u32 %v1101_v35, %v1098_v34  ;;  %v712_v45 = vshll.u32 %v3124_v36, 16  ;;  %v716_v46 = vshrl.u32 %v3124_v36, 16  ;;  %v3148_v47 = vld [vmem:[%s4243_s4 + $0x1c] sm:$0xf]  ;;  %v705_v50 = vrot.slane %v703_v41, 4  ;;  %v4544_v7 = vld [vmem:[%s5074_s1 + $0x230] sm:$0xff]  }
  0x85   : > { %v1112_v48 = vor.u32 %v1111_v39, %v1107_v38  ;;  %v722_v52 = vshll.u32 %v3125_v37, 16  ;;  %v3149_v53 = vld [vmem:[%s4243_s4 + $0x20] sm:$0x1]  ;;  %v3169_v54 = vrot.slane %v3147_v42, 9  ;;  %v708_v56 = vrot.slane %v706_v44, 5  ;;  %v4565_v37 = vld [vmem:[%s5074_s1 + $0x228] sm:$0xff]  }
  0x86   : > { %v1103_v55 = vrot.slane %v1102_v43, 4  ;;  %v714_v57 = vrot.slane %v712_v45, 5  ;;  %v718_v58 = vrot.slane %v716_v46, 4  ;;  %v3178_v59 = vld [vmem:[%s4243_s4 + $0x24] sm:$0xf]  ;;  %v959_v62 = vrot.slane %v3148_v47, 5 }
  0x87   : > { %v1113_v60 = vrot.slane %v1112_v48, 4  ;;  %v962_v63 = vrot.slane %v3149_v53, 5  ;;  %v3179_v0 = vld [vmem:[%s4243_s4 + $0x28] sm:$0xf]  ;;  %1057 = vst [vmem:[#allocation2 + $0x60] sm:$0xf] %v3178_v59  ;;  %v709_v2 = vor.u32 %v708_v56, %v705_v50 }
  0x88   : > { %v1108_v1 = vsel %vm4270_vm5, %v1103_v55, %v1107_v38  ;;  %v719_v3 = vor.u32 %v718_v58, %v714_v57  ;;  %v724_v4 = vrot.slane %v722_v52, 5  ;;  %1058 = vst [vmem:[#allocation2 + $0x84] sm:$0xf] %v3179_v0  ;;  %v3195_v5 = vld [vmem:[%s4243_s4 + $0x24] sm:$0xf]  ;;  %v960_v11 = vsel %vm4264_vm4, %v3169_v54, %v959_v62 }
  0x89   : > { %v3196_v6 = vld [vmem:[%s4243_s4 + $0x28] sm:$0xf]  ;;  %v3901_v8 = vld [vmem:[#allocation2 + $0x10] ss:$36 sps:$4 sm:$0xff]   ;;  %v1118_v10 = vsel %vm4270_vm5, %v1113_v60, %v1117_v40  ;;  %1303 = vst [vmem:[#allocation2 + $0x1c] sm:$0xf] %v1108_v1 }
  0x8a   : > { %v3903_v9 = vld [vmem:[#allocation2 + $0x14] ss:$36 sps:$4 sm:$0xff]   ;;  %v961_v12 = vrot.slane %v959_v62, 4  ;;  %1304 = vst [vmem:[#allocation2 + $0x40] sm:$0xf] %v1118_v10  ;;  %v710_v13 = vrot.slane %v709_v2, 4 }
  0x8b   : > { %v720_v14 = vrot.slane %v719_v3, 4  ;;  %1024 = vst [vmem:[#allocation2 + $0x5c] sm:$0xf] %v960_v11  ;;  %v3197_v15 = vld [vmem:[%s4243_s4 + $0x2c] sm:$0x1]  ;;  %v1120_v16 = vshrl.u32 %v3195_v5, 16  ;;  %2712 = vmatprep.mubr.bf16.mxu0 %v3903_v9 }
  0x8c   : > { %v1123_v17 = vshll.u32 %v3195_v5, 16  ;;  %v963_v18 = vsel %vm4264_vm4, %v961_v12, %v962_v63  ;;  %v1129_v19 = vshll.u32 %v3196_v6, 16  ;;  %v1133_v20 = vshrl.u32 %v3196_v6, 16  ;;  %2713 = vmatmul.mubr.bf16.vlgmr.msra.gmra.mxu0 %v3901_v8  ;;  %v3126_v26 = vld [vmem:[%s4243_s4 + $0x24] sm:$0xf]  ;;  %v4592_v12 = vld [vmem:[%s5074_s1 + $0x218] sm:$0xff]  }
  0x8d   : > { %v1139_v21 = vshll.u32 %v3197_v15, 16  ;;  %v715_v22 = vsel %vm4270_vm5, %v710_v13, %v714_v57  ;;  %v725_v23 = vsel %vm4270_vm5, %v720_v14, %v724_v4  ;;  %1025 = vst [vmem:[#allocation2 + $0x80] sm:$0xf] %v963_v18  ;;  %v1122_v24 = vrot.slane %v1120_v16, 4  ;;  %3674 = vmatpush3.bf16.msra.mxu0 %v4510_v61  ;;  %v3127_v30 = vld [vmem:[%s4243_s4 + $0x28] sm:$0xf] }
  0x8e   : > { %v1125_v25 = vrot.slane %v1123_v17, 5  ;;  %888 = vst [vmem:[#allocation2 + $0x58] sm:$0xf] %v715_v22  ;;  %889 = vst [vmem:[#allocation2 + $0x7c] sm:$0xf] %v725_v23  ;;  %v1131_v27 = vrot.slane %v1129_v19, 5  ;;  %3675 = vmatprep.subr.bf16.mxu0 %v4544_v7 }
  0x8f   : > { %v1135_v28 = vrot.slane %v1133_v20, 4  ;;  %v1141_v29 = vrot.slane %v1139_v21, 5  ;;  %v727_v31 = vshrl.u32 %v3126_v26, 16  ;;  %v3128_v33 = vld [vmem:[%s4243_s4 + $0x2c] sm:$0x1]  ;;  %v730_v34 = vshll.u32 %v3126_v26, 16 }
  0x90   : > { %v1126_v32 = vor.u32 %v1125_v25, %v1122_v24  ;;  %v736_v35 = vshll.u32 %v3127_v30, 16  ;;  %v740_v36 = vshrl.u32 %v3127_v30, 16  ;;  %v746_v40 = vshll.u32 %v3128_v33, 16  ;;  %v3150_v41 = vld [vmem:[%s4243_s4 + $0x24] sm:$0xe] }
  0x91   : > { %v1136_v38 = vor.u32 %v1135_v28, %v1131_v27  ;;  %v729_v39 = vrot.slane %v727_v31, 4  ;;  %v3151_v42 = vld [vmem:[%s4243_s4 + $0x28] sm:$0xf]  ;;  %v732_v44 = vrot.slane %v730_v34, 5  ;;  %v3904_v47 = vld [vmem:[#allocation2 + $0x18] ss:$36 sps:$4 sm:$0xff]   ;;  %3676 = vmatpush3.bf16.msra.mxu0 %v4544_v7 }
  0x92   : > { %v1127_v43 = vrot.slane %v1126_v32, 4  ;;  %v738_v45 = vrot.slane %v736_v35, 5  ;;  %v742_v46 = vrot.slane %v740_v36, 4  ;;  %v3906_v48 = vld [vmem:[#allocation2 + $0x1c] ss:$36 sps:$4 sm:$0xff]   ;;  %v748_v55 = vrot.slane %v746_v40, 5  ;;  %3677 = vmatprep.subr.bf16.mxu0 %v4565_v37 }
  0x93   : > { %v1137_v50 = vrot.slane %v1136_v38, 4  ;;  %v733_v53 = vor.u32 %v732_v44, %v729_v39  ;;  %v3152_v56 = vld [vmem:[%s4243_s4 + $0x2c] sm:$0x1]  ;;  %v3180_v57 = vld [vmem:[%s4243_s4 + $0x30] sm:$0xf]  ;;  %2809 = vmatprep.mubr.bf16.mxu1 %v3906_v48  ;;  %v3170_v59 = vrot.slane %v3150_v41, 9 }
  0x94   : > { %v1132_v52 = vsel %vm4270_vm5, %v1127_v43, %v1131_v27  ;;  %v743_v54 = vor.u32 %v742_v46, %v738_v45  ;;  %v966_v60 = vrot.slane %v3151_v42, 5  ;;  %v969_v62 = vrot.slane %v3152_v56, 5  ;;  %v3181_v63 = vld [vmem:[%s4243_s4 + $0x34] sm:$0xf]  ;;  %1059 = vst [vmem:[#allocation2 + $0xa8] sm:$0xf] %v3180_v57  ;;  %2810 = vmatmul.mubr.bf16.vlgmr.msra.gmra.mxu1 %v3904_v47 }
  0x95   : > { %v1142_v58 = vsel %vm4270_vm5, %v1137_v50, %v1141_v29  ;;  %1305 = vst [vmem:[#allocation2 + $0x64] sm:$0xf] %v1132_v52  ;;  %v4581_v0 = vld [vmem:[%s5074_s1 + $0x220] sm:$0xff]   ;;  %v1467_v1 = vld [vmem:[#allocation2 + $0x58] sm:$0xff]  ;;  %v734_v4 = vrot.slane %v733_v53, 4  ;;  %3713 = vmatpush3.bf16.msra.mxu1 %v4510_v61  ;;  %3678 = vmatpush3.bf16.msra.mxu0 %v4565_v37 }
  0x96   : > { %v1472_v2 = vld [vmem:[#allocation2 + $0x7c] sm:$0xff]  ;;  %1306 = vst [vmem:[#allocation2 + $0x88] sm:$0xf] %v1142_v58  ;;  %v744_v5 = vrot.slane %v743_v54, 4  ;;  %1060 = vst [vmem:[#allocation2 + $0xcc] sm:$0xf] %v3181_v63  ;;  %v967_v8 = vsel %vm4264_vm4, %v3170_v59, %v966_v60  ;;  %3706 = vmatprep.subr.bf16.mxu1 %v4544_v7  ;;  %3679 = vmatprep.subr.bf16.mxu0 %v4581_v0 }
  0x97   : > { %v3908_v3 = vld [vmem:[#allocation2 + $0x5c] ss:$36 sps:$4 sm:$0xff]   ;;  %v3262_v6 = vcombine.low %v1467_v1, %v1472_v2  ;;  %v968_v9 = vrot.slane %v966_v60, 4  ;;  %v3198_v10 = vld [vmem:[%s4243_s4 + $0x30] sm:$0xf]  ;;  %v739_v61 = vsel %vm4270_vm5, %v734_v4, %v738_v45  ;;  %v4632_v2 = vld [vmem:[%s5074_s1 + $0x208] sm:$0xff]  }
  0x98   : > { %v3199_v11 = vld [vmem:[%s4243_s4 + $0x34] sm:$0xf]  ;;  %2720 = vmatprep.mubr.bf16.mxu0 %v3908_v3  ;;  %v749_v13 = vsel %vm4270_vm5, %v744_v5, %v748_v55  ;;  %1026 = vst [vmem:[#allocation2 + $0xa4] sm:$0xf] %v967_v8  ;;  %v3200_v14 = vld [vmem:[%s4243_s4 + $0x38] sm:$0x1] }
  0x99   : > { %v1144_v15 = vshrl.u32 %v3198_v10, 16  ;;  %v1147_v16 = vshll.u32 %v3198_v10, 16  ;;  %2721 = vmatmul.mubr.bf16.gmra.mxu0 %v3262_v6  ;;  %890 = vst [vmem:[#allocation2 + $0xa0] sm:$0xf] %v739_v61  ;;  %891 = vst [vmem:[#allocation2 + $0xc4] sm:$0xf] %v749_v13  ;;  %v970_v17 = vsel %vm4264_vm4, %v968_v9, %v969_v62  ;;  %3714 = vmatpush3.bf16.msra.mxu1 %v4544_v7 }
  0x9a   : > { %v1153_v18 = vshll.u32 %v3199_v11, 16  ;;  %v1157_v19 = vshrl.u32 %v3199_v11, 16  ;;  %v1163_v20 = vshll.u32 %v3200_v14, 16  ;;  %1027 = vst [vmem:[#allocation2 + $0xc8] sm:$0xf] %v970_v17  ;;  %3680 = vmatpush3.bf16.msra.mxu0 %v4581_v0  ;;  %3707 = vmatprep.subr.bf16.mxu1 %v4565_v37  ;;  %v4614_v7 = vld [vmem:[%s5074_s1 + $0x210] sm:$0xff]  }
  0x9b   : > { %v1146_v21 = vrot.slane %v1144_v15, 4  ;;  %v1149_v22 = vrot.slane %v1147_v16, 5  ;;  %v3129_v23 = vld [vmem:[%s4243_s4 + $0x30] sm:$0xf]  ;;  %v3130_v24 = vld [vmem:[%s4243_s4 + $0x34] sm:$0xf]  ;;  %3681 = vmatprep.subr.bf16.mxu0 %v4592_v12 }
  0x9c   : > { %v1155_v25 = vrot.slane %v1153_v18, 5  ;;  %v1159_v26 = vrot.slane %v1157_v19, 4  ;;  %v1165_v27 = vrot.slane %v1163_v20, 5  ;;  %v3131_v28 = vld [vmem:[%s4243_s4 + $0x38] sm:$0x1]  ;;  %v751_v29 = vshrl.u32 %v3129_v23, 16 }
  0x9d   : > { %v1150_v30 = vor.u32 %v1149_v22, %v1146_v21  ;;  %v754_v31 = vshll.u32 %v3129_v23, 16  ;;  %v760_v32 = vshll.u32 %v3130_v24, 16  ;;  %v764_v33 = vshrl.u32 %v3130_v24, 16  ;;  %v3153_v34 = vld [vmem:[%s4243_s4 + $0x30] sm:$0xe]  ;;  %3715 = vmatpush3.bf16.msra.mxu1 %v4565_v37  ;;  %v4651_v21 = vld [vmem:[%s5074_s1 + $0x200] sm:$0xff]  }
  0x9e   : > { %v3910_v35 = vld [vmem:[#allocation2 + $0x64] ss:$36 sps:$4 sm:$0xff]   ;;  %v1160_v38 = vor.u32 %v1159_v26, %v1155_v25  ;;  %v753_v39 = vrot.slane %v751_v29, 4  ;;  %v3154_v44 = vld [vmem:[%s4243_s4 + $0x34] sm:$0xf]  ;;  %v770_v46 = vshll.u32 %v3131_v28, 16  ;;  %3708 = vmatprep.subr.bf16.mxu1 %v4581_v0  ;;  %3682 = vmatpush3.bf16.msra.mxu0 %v4592_v12 }
  0x9f   : > { %v3912_v36 = vld [vmem:[#allocation2 + $0x60] ss:$36 sps:$4 sm:$0xff]   ;;  %v1151_v40 = vrot.slane %v1150_v30, 4  ;;  %v756_v41 = vrot.slane %v754_v31, 5  ;;  %v762_v42 = vrot.slane %v760_v32, 5  ;;  %v766_v43 = vrot.slane %v764_v33, 4  ;;  %2817 = vmatprep.mubr.bf16.mxu1 %v3910_v35  ;;  %3683 = vmatprep.subr.bf16.mxu0 %v4614_v7 }
  0xa0   : > { %v1161_v45 = vrot.slane %v1160_v38, 4  ;;  %v3155_v47 = vld [vmem:[%s4243_s4 + $0x38] sm:$0x1]  ;;  %v3171_v48 = vrot.slane %v3153_v34, 9  ;;  %v973_v50 = vrot.slane %v3154_v44, 5  ;;  %2818 = vmatmul.mubr.bf16.gmra.mxu1 %v3912_v36  ;;  %v1477_v52 = vld [vmem:[#allocation2 + $0xa0] sm:$0xff] }
  0xa1   : > { %v1156_v53 = vsel %vm4270_vm5, %v1151_v40, %v1155_v25  ;;  %v757_v54 = vor.u32 %v756_v41, %v753_v39  ;;  %v767_v55 = vor.u32 %v766_v43, %v762_v42  ;;  %v976_v56 = vrot.slane %v3155_v47, 5  ;;  %v3182_v57 = vld [vmem:[%s4243_s4 + $0x3c] sm:$0xf]  ;;  %v3183_v58 = vld [vmem:[%s4243_s4 + $0x40] sm:$0xf]  ;;  %v1482_v59 = vld [vmem:[#allocation2 + $0xc4] sm:$0xff]  ;;  %3716 = vmatpush3.bf16.msra.mxu1 %v4581_v0 }
  0xa2   : > { %v3914_v60 = vld [vmem:[#allocation2 + $0xa4] ss:$36 sps:$4 sm:$0xff]   ;;  %v1166_v37 = vsel %vm4270_vm5, %v1161_v45, %v1165_v27  ;;  %1307 = vst [vmem:[#allocation2 + $0xac] sm:$0xf] %v1156_v53  ;;  %v772_v62 = vrot.slane %v770_v46, 5  ;;  %v974_v63 = vsel %vm4264_vm4, %v3171_v48, %v973_v50  ;;  %v975_v1 = vrot.slane %v973_v50, 4  ;;  %3709 = vmatprep.subr.bf16.mxu1 %v4592_v12  ;;  %3684 = vmatpush3.bf16.msra.mxu0 %v4614_v7 }
  0xa3   : > { %1061 = vst [vmem:[#allocation2 + $0xf0] sm:$0xf] %v3182_v57  ;;  %1062 = vst [vmem:[#allocation2 + $0x114] sm:$0xf] %v3183_v58  ;;  %v3271_v3 = vcombine.low %v1477_v52, %v1482_v59  ;;  %v758_v4 = vrot.slane %v757_v54, 4  ;;  %v768_v5 = vrot.slane %v767_v55, 4  ;;  %2728 = vmatprep.mubr.bf16.mxu0 %v3914_v60  ;;  %3685 = vmatprep.subr.bf16.mxu0 %v4632_v2 }
  0xa4   : > { %1308 = vst [vmem:[#allocation2 + $0xd0] sm:$0xf] %v1166_v37  ;;  %1028 = vst [vmem:[#allocation2 + $0xec] sm:$0xf] %v974_v63  ;;  %v3201_v6 = vld [vmem:[%s4243_s4 + $0x3c] sm:$0xf]  ;;  %v977_v9 = vsel %vm4264_vm4, %v975_v1, %v976_v56 }
  0xa5   : > { %v3202_v8 = vld [vmem:[%s4243_s4 + $0x40] sm:$0xf]  ;;  %v3203_v10 = vld [vmem:[%s4243_s4 + $0x44] sm:$0x1]  ;;  %v1168_v11 = vshrl.u32 %v3201_v6, 16  ;;  %v1171_v61 = vshll.u32 %v3201_v6, 16  ;;  %2729 = vmatmul.mubr.bf16.gmra.mxu0 %v3271_v3  ;;  %v763_v14 = vsel %vm4270_vm5, %v758_v4, %v762_v42  ;;  %v773_v15 = vsel %vm4270_vm5, %v768_v5, %v772_v62  ;;  %3717 = vmatpush3.bf16.msra.mxu1 %v4592_v12 }
  0xa6   : > { %v1177_v13 = vshll.u32 %v3202_v8, 16  ;;  %1029 = vst [vmem:[#allocation2 + $0x110] sm:$0xf] %v977_v9  ;;  %v1181_v16 = vshrl.u32 %v3202_v8, 16  ;;  %v1187_v17 = vshll.u32 %v3203_v10, 16  ;;  %3710 = vmatprep.subr.bf16.mxu1 %v4614_v7  ;;  %3686 = vmatpush3.bf16.msra.mxu0 %v4632_v2 }
  0xa7   : > { %892 = vst [vmem:[#allocation2 + $0xe8] sm:$0xf] %v763_v14  ;;  %893 = vst [vmem:[#allocation2 + $0x10c] sm:$0xf] %v773_v15  ;;  %v1170_v18 = vrot.slane %v1168_v11, 4  ;;  %v1173_v19 = vrot.slane %v1171_v61, 5  ;;  %3687 = vmatprep.subr.bf16.mxu0 %v4651_v21 }
  0xa8   : > { %v1179_v0 = vrot.slane %v1177_v13, 5  ;;  %v3132_v20 = vld [vmem:[%s4243_s4 + $0x3c] sm:$0xf]  ;;  %v1183_v22 = vrot.slane %v1181_v16, 4  ;;  %v1189_v23 = vrot.slane %v1187_v17, 5 }
  0xa9   : > { %v3133_v24 = vld [vmem:[%s4243_s4 + $0x40] sm:$0xf]  ;;  %v3134_v25 = vld [vmem:[%s4243_s4 + $0x44] sm:$0x1]  ;;  %v1174_v26 = vor.u32 %v1173_v19, %v1170_v18  ;;  %v775_v27 = vshrl.u32 %v3132_v20, 16  ;;  %v778_v28 = vshll.u32 %v3132_v20, 16  ;;  %3718 = vmatpush3.bf16.msra.mxu1 %v4614_v7 }
  0xaa   : > { %v784_v29 = vshll.u32 %v3133_v24, 16  ;;  %v3156_v30 = vld [vmem:[%s4243_s4 + $0x3c] sm:$0xe]  ;;  %v1184_v31 = vor.u32 %v1183_v22, %v1179_v0  ;;  %v788_v32 = vshrl.u32 %v3133_v24, 16  ;;  %v794_v33 = vshll.u32 %v3134_v25, 16  ;;  %3711 = vmatprep.subr.bf16.mxu1 %v4632_v2  ;;  %3688 = vmatpush3.bf16.msra.mxu0 %v4651_v21 }
  0xab   : > { %v3157_v34 = vld [vmem:[%s4243_s4 + $0x40] sm:$0xf]  ;;  %v3172_v35 = vrot.slane %v3156_v30, 9  ;;  %v3916_v36 = vld [vmem:[#allocation2 + $0xac] ss:$36 sps:$4 sm:$0xff]   ;;  %v1175_v39 = vrot.slane %v1174_v26, 4 }
  0xac   : > { %v3918_v38 = vld [vmem:[#allocation2 + $0xa8] ss:$36 sps:$4 sm:$0xff]   ;;  %v1185_v40 = vrot.slane %v1184_v31, 4  ;;  %v777_v41 = vrot.slane %v775_v27, 4  ;;  %v780_v42 = vrot.slane %v778_v28, 5  ;;  %v786_v43 = vrot.slane %v784_v29, 5  ;;  %2825 = vmatprep.mubr.bf16.mxu1 %v3916_v36 }
  0xad   : > { %v3158_v44 = vld [vmem:[%s4243_s4 + $0x44] sm:$0x1]  ;;  %v1180_v12 = vsel %vm4270_vm5, %v1175_v39, %v1179_v0  ;;  %v790_v45 = vrot.slane %v788_v32, 4  ;;  %v980_v46 = vrot.slane %v3157_v34, 5  ;;  %v3184_v47 = vld [vmem:[%s4243_s4 + $0x48] sm:$0xf]  ;;  %2826 = vmatmul.mubr.bf16.gmra.mxu1 %v3918_v38 }
  0xae   : > { %v1487_v48 = vld [vmem:[#allocation2 + $0xe8] sm:$0xff]  ;;  %v1190_v53 = vsel %vm4270_vm5, %v1185_v40, %v1189_v23  ;;  %1309 = vst [vmem:[#allocation2 + $0xf4] sm:$0xf] %v1180_v12  ;;  %v781_v54 = vor.u32 %v780_v42, %v777_v41  ;;  %v796_v55 = vrot.slane %v794_v33, 5  ;;  %v983_v56 = vrot.slane %v3158_v44, 5  ;;  %3719 = vmatpush3.bf16.msra.mxu1 %v4632_v2 }
  0xaf   : > { %v1492_v50 = vld [vmem:[#allocation2 + $0x10c] sm:$0xff]  ;;  %1063 = vst [vmem:[#allocation2 + $0x138] sm:$0xf] %v3184_v47  ;;  %1310 = vst [vmem:[#allocation2 + $0x118] sm:$0xf] %v1190_v53  ;;  %v791_v57 = vor.u32 %v790_v45, %v786_v43  ;;  %v981_v58 = vsel %vm4264_vm4, %v3172_v35, %v980_v46  ;;  %v982_v59 = vrot.slane %v980_v46, 4  ;;  %3712 = vmatprep.subr.bf16.mxu1 %v4651_v21 }
  0xb0   : > { %v3920_v52 = vld [vmem:[#allocation2 + $0xec] ss:$36 sps:$4 sm:$0xff]   ;;  %v3280_v7 = vcombine.low %v1487_v48, %v1492_v50  ;;  %v3204_v37 = vld [vmem:[%s4243_s4 + $0x48] sm:$0xf]  ;;  %v782_v62 = vrot.slane %v781_v54, 4 }
  0xb1   : > { %v3185_v60 = vld [vmem:[%s4243_s4 + $0x4c] sm:$0xf]  ;;  %2736 = vmatprep.mubr.bf16.mxu0 %v3920_v52  ;;  %1030 = vst [vmem:[#allocation2 + $0x134] sm:$0xf] %v981_v58  ;;  %v3206_v1 = vld [vmem:[%s4243_s4 + $0x50] sm:$0x1]  ;;  %v984_v5 = vsel %vm4264_vm4, %v982_v59, %v983_v56 }
  0xb2   : > { %1064 = vst [vmem:[#allocation2 + $0x15c] sm:$0xf] %v3185_v60  ;;  %v3205_v63 = vld [vmem:[%s4243_s4 + $0x4c] sm:$0xf]  ;;  %v1192_v3 = vshrl.u32 %v3204_v37, 16  ;;  %2737 = vmatmul.mubr.bf16.gmra.mxu0 %v3280_v7  ;;  %v792_v4 = vrot.slane %v791_v57, 4  ;;  %v787_v9 = vsel %vm4270_vm5, %v782_v62, %v786_v43  ;;  %3720 = vmatpush3.bf16.msra.mxu1 %v4651_v21 }
  0xb3   : > { %v1195_v6 = vshll.u32 %v3204_v37, 16  ;;  %v1201_v8 = vshll.u32 %v3205_v63, 16  ;;  %1031 = vst [vmem:[#allocation2 + $0x158] sm:$0xf] %v984_v5  ;;  %v1205_v11 = vshrl.u32 %v3205_v63, 16  ;;  %v1211_v61 = vshll.u32 %v3206_v1, 16 }
  0xb4   : > { %v1194_v10 = vrot.slane %v1192_v3, 4  ;;  %v797_v13 = vsel %vm4270_vm5, %v792_v4, %v796_v55  ;;  %894 = vst [vmem:[#allocation2 + $0x130] sm:$0xf] %v787_v9  ;;  %v3135_v16 = vld [vmem:[%s4243_s4 + $0x48] sm:$0xf] }
  0xb5   : > { %v1197_v14 = vrot.slane %v1195_v6, 5  ;;  %v1203_v15 = vrot.slane %v1201_v8, 5  ;;  %v3136_v17 = vld [vmem:[%s4243_s4 + $0x4c] sm:$0xf]  ;;  %895 = vst [vmem:[#allocation2 + $0x154] sm:$0xf] %v797_v13 }
  0xb6   : > { %v1207_v2 = vrot.slane %v1205_v11, 4  ;;  %v1213_v18 = vrot.slane %v1211_v61, 5  ;;  %v3137_v19 = vld [vmem:[%s4243_s4 + $0x50] sm:$0x1]  ;;  %v799_v0 = vshrl.u32 %v3135_v16, 16  ;;  %v802_v20 = vshll.u32 %v3135_v16, 16 }
  0xb7   : > { %v1198_v22 = vor.u32 %v1197_v14, %v1194_v10  ;;  %v808_v23 = vshll.u32 %v3136_v17, 16  ;;  %v812_v24 = vshrl.u32 %v3136_v17, 16  ;;  %v818_v25 = vshll.u32 %v3137_v19, 16  ;;  %v3159_v26 = vld [vmem:[%s4243_s4 + $0x48] sm:$0xe] }
  0xb8   : > { %v3922_v27 = vld [vmem:[#allocation2 + $0xf4] ss:$36 sps:$4 sm:$0xff]   ;;  %v1208_v29 = vor.u32 %v1207_v2, %v1203_v15  ;;  %v801_v30 = vrot.slane %v799_v0, 4  ;;  %v804_v32 = vrot.slane %v802_v20, 5  ;;  %v3160_v35 = vld [vmem:[%s4243_s4 + $0x4c] sm:$0xf] }
  0xb9   : > { %v3924_v28 = vld [vmem:[#allocation2 + $0xf0] ss:$36 sps:$4 sm:$0xff]   ;;  %v1199_v31 = vrot.slane %v1198_v22, 4  ;;  %v810_v33 = vrot.slane %v808_v23, 5  ;;  %v814_v34 = vrot.slane %v812_v24, 4  ;;  %2833 = vmatprep.mubr.bf16.mxu1 %v3922_v27  ;;  %v820_v38 = vrot.slane %v818_v25, 5 }
  0xba   : > { %v1209_v36 = vrot.slane %v1208_v29, 4  ;;  %v3161_v39 = vld [vmem:[%s4243_s4 + $0x50] sm:$0x1]  ;;  %v3173_v40 = vrot.slane %v3159_v26, 9  ;;  %v987_v41 = vrot.slane %v3160_v35, 5  ;;  %2834 = vmatmul.mubr.bf16.gmra.mxu1 %v3924_v28  ;;  %v805_v42 = vor.u32 %v804_v32, %v801_v30 }
  0xbb   : > { %v1204_v21 = vsel %vm4270_vm5, %v1199_v31, %v1203_v15  ;;  %v815_v43 = vor.u32 %v814_v34, %v810_v33  ;;  %v990_v44 = vrot.slane %v3161_v39, 5  ;;  %v3186_v12 = vld [vmem:[%s4243_s4 + $0x54] sm:$0xf]  ;;  %v3187_v45 = vld [vmem:[%s4243_s4 + $0x58] sm:$0xf] }
  0xbc   : > { %v1497_v46 = vld [vmem:[#allocation2 + $0x130] sm:$0xff]  ;;  %v1214_v47 = vsel %vm4270_vm5, %v1209_v36, %v1213_v18  ;;  %1311 = vst [vmem:[#allocation2 + $0x13c] sm:$0xf] %v1204_v21  ;;  %v988_v48 = vsel %vm4264_vm4, %v3173_v40, %v987_v41  ;;  %v989_v50 = vrot.slane %v987_v41, 4  ;;  %1065 = vst [vmem:[#allocation2 + $0x180] sm:$0xf] %v3186_v12 }
  0xbd   : > { %1066 = vst [vmem:[#allocation2 + $0x1a4] sm:$0xf] %v3187_v45  ;;  %v3207_v52 = vld [vmem:[%s4243_s4 + $0x54] sm:$0xf]  ;;  %v3208_v53 = vld [vmem:[%s4243_s4 + $0x58] sm:$0xf] }
  0xbe   : > { %v1502_v54 = vld [vmem:[#allocation2 + $0x154] sm:$0xff]  ;;  %1312 = vst [vmem:[#allocation2 + $0x160] sm:$0xf] %v1214_v47  ;;  %v806_v56 = vrot.slane %v805_v42, 4  ;;  %v816_v7 = vrot.slane %v815_v43, 4  ;;  %v1216_v57 = vshrl.u32 %v3207_v52, 16  ;;  %v991_v59 = vsel %vm4264_vm4, %v989_v50, %v990_v44 }
  0xbf   : > { %v3926_v55 = vld [vmem:[#allocation2 + $0x134] ss:$36 sps:$4 sm:$0xff]   ;;  %1032 = vst [vmem:[#allocation2 + $0x17c] sm:$0xf] %v988_v48  ;;  %v3289_v58 = vcombine.low %v1497_v46, %v1502_v54  ;;  %v3209_v60 = vld [vmem:[%s4243_s4 + $0x5c] sm:$0x1] }
  0xc0   : > { %v1219_v37 = vshll.u32 %v3207_v52, 16  ;;  %v1225_v62 = vshll.u32 %v3208_v53, 16  ;;  %2744 = vmatprep.mubr.bf16.mxu0 %v3926_v55  ;;  %v811_v63 = vsel %vm4270_vm5, %v806_v56, %v810_v33  ;;  %v821_v1 = vsel %vm4270_vm5, %v816_v7, %v820_v38  ;;  %1033 = vst [vmem:[#allocation2 + $0x1a0] sm:$0xf] %v991_v59  ;;  %v3138_v5 = vld [vmem:[%s4243_s4 + $0x54] sm:$0xf] }
  0xc1   : > { %v1218_v3 = vrot.slane %v1216_v57, 4  ;;  %v1229_v4 = vshrl.u32 %v3208_v53, 16  ;;  %2745 = vmatmul.mubr.bf16.gmra.mxu0 %v3289_v58  ;;  %896 = vst [vmem:[#allocation2 + $0x178] sm:$0xf] %v811_v63  ;;  %897 = vst [vmem:[#allocation2 + $0x19c] sm:$0xf] %v821_v1 }
  0xc2   : > { %v1221_v6 = vrot.slane %v1219_v37, 5  ;;  %v1227_v8 = vrot.slane %v1225_v62, 5  ;;  %v1235_v9 = vshll.u32 %v3209_v60, 16  ;;  %v3139_v10 = vld [vmem:[%s4243_s4 + $0x58] sm:$0xf]  ;;  %v823_v11 = vshrl.u32 %v3138_v5, 16 }
  0xc3   : > { %v1231_v61 = vrot.slane %v1229_v4, 4  ;;  %v3140_v13 = vld [vmem:[%s4243_s4 + $0x5c] sm:$0x1]  ;;  %v826_v14 = vshll.u32 %v3138_v5, 16  ;;  %v832_v15 = vshll.u32 %v3139_v10, 16  ;;  %v836_v16 = vshrl.u32 %v3139_v10, 16 }
  0xc4   : > { %v1222_v17 = vor.u32 %v1221_v6, %v1218_v3  ;;  %v1237_v2 = vrot.slane %v1235_v9, 5  ;;  %v825_v18 = vrot.slane %v823_v11, 4  ;;  %v842_v19 = vshll.u32 %v3140_v13, 16  ;;  %v3162_v0 = vld [vmem:[%s4243_s4 + $0x54] sm:$0xe] }
  0xc5   : > { %v1232_v20 = vor.u32 %v1231_v61, %v1227_v8  ;;  %v828_v22 = vrot.slane %v826_v14, 5  ;;  %v834_v23 = vrot.slane %v832_v15, 5  ;;  %v838_v24 = vrot.slane %v836_v16, 4  ;;  %v3163_v25 = vld [vmem:[%s4243_s4 + $0x58] sm:$0xf] }
  0xc6   : > { %v3928_v26 = vld [vmem:[#allocation2 + $0x13c] ss:$36 sps:$4 sm:$0xff]   ;;  %v1223_v28 = vrot.slane %v1222_v17, 4  ;;  %v844_v32 = vrot.slane %v842_v19, 5  ;;  %v3174_v36 = vrot.slane %v3162_v0, 9  ;;  %v994_v38 = vrot.slane %v3163_v25, 5 }
  0xc7   : > { %v3930_v27 = vld [vmem:[#allocation2 + $0x138] ss:$36 sps:$4 sm:$0xff]   ;;  %v1233_v29 = vrot.slane %v1232_v20, 4  ;;  %v829_v30 = vor.u32 %v828_v22, %v825_v18  ;;  %v839_v31 = vor.u32 %v838_v24, %v834_v23  ;;  %v3188_v34 = vld [vmem:[%s4243_s4 + $0x60] sm:$0xf]  ;;  %2841 = vmatprep.mubr.bf16.mxu1 %v3928_v26 }
  0xc8   : > { %v3164_v33 = vld [vmem:[%s4243_s4 + $0x5c] sm:$0x1]  ;;  %v1228_v35 = vsel %vm4270_vm5, %v1223_v28, %v1227_v8  ;;  %v3189_v40 = vld [vmem:[%s4243_s4 + $0x64] sm:$0xf]  ;;  %1067 = vst [vmem:[#allocation2 + $0x1c8] sm:$0xf] %v3188_v34  ;;  %2842 = vmatmul.mubr.bf16.gmra.mxu1 %v3930_v27  ;;  %v995_v46 = vsel %vm4264_vm4, %v3174_v36, %v994_v38 }
  0xc9   : > { %v997_v39 = vrot.slane %v3164_v33, 5  ;;  %v1507_v41 = vld [vmem:[#allocation2 + $0x178] sm:$0xff]  ;;  %v1238_v43 = vsel %vm4270_vm5, %v1233_v29, %v1237_v2  ;;  %1313 = vst [vmem:[#allocation2 + $0x184] sm:$0xf] %v1228_v35  ;;  %v830_v44 = vrot.slane %v829_v30, 4  ;;  %v840_v12 = vrot.slane %v839_v31, 4 }
  0xca   : > { %v1512_v21 = vld [vmem:[#allocation2 + $0x19c] sm:$0xff]  ;;  %1068 = vst [vmem:[#allocation2 + $0x1ec] sm:$0xf] %v3189_v40  ;;  %1314 = vst [vmem:[#allocation2 + $0x1a8] sm:$0xf] %v1238_v43  ;;  %v996_v47 = vrot.slane %v994_v38, 4 }
  0xcb   : > { %v3932_v42 = vld [vmem:[#allocation2 + $0x17c] ss:$36 sps:$4 sm:$0xff]   ;;  %v3298_v45 = vcombine.low %v1507_v41, %v1512_v21  ;;  %v3211_v50 = vld [vmem:[%s4243_s4 + $0x64] sm:$0xf]  ;;  %v835_v52 = vsel %vm4270_vm5, %v830_v44, %v834_v23  ;;  %v845_v53 = vsel %vm4270_vm5, %v840_v12, %v844_v32  ;;  %1034 = vst [vmem:[#allocation2 + $0x1c4] sm:$0xf] %v995_v46 }
  0xcc   : > { %v3210_v48 = vld [vmem:[%s4243_s4 + $0x60] sm:$0xf]  ;;  %2752 = vmatprep.mubr.bf16.mxu0 %v3932_v42  ;;  %v3212_v54 = vld [vmem:[%s4243_s4 + $0x68] sm:$0x1]  ;;  %898 = vst [vmem:[#allocation2 + $0x1c0] sm:$0xf] %v835_v52  ;;  %v998_v7 = vsel %vm4264_vm4, %v996_v47, %v997_v39 }
  0xcd   : > { %v1240_v55 = vshrl.u32 %v3210_v48, 16  ;;  %v1243_v56 = vshll.u32 %v3210_v48, 16  ;;  %2753 = vmatmul.mubr.bf16.gmra.mxu0 %v3298_v45  ;;  %899 = vst [vmem:[#allocation2 + $0x1e4] sm:$0xf] %v845_v53  ;;  %v1249_v57 = vshll.u32 %v3211_v50, 16  ;;  %v1253_v58 = vshrl.u32 %v3211_v50, 16 }
  0xce   : > { %v1259_v59 = vshll.u32 %v3212_v54, 16  ;;  %1035 = vst [vmem:[#allocation2 + $0x1e8] sm:$0xf] %v998_v7  ;;  %v3141_v62 = vld [vmem:[%s4243_s4 + $0x60] sm:$0xf] }
  0xcf   : > { %v1242_v60 = vrot.slane %v1240_v55, 4  ;;  %v1245_v37 = vrot.slane %v1243_v56, 5  ;;  %v3142_v63 = vld [vmem:[%s4243_s4 + $0x64] sm:$0xf]  ;;  %v1251_v1 = vrot.slane %v1249_v57, 5  ;;  %v1255_v3 = vrot.slane %v1253_v58, 4 }
  0xd0   : > { %v1261_v4 = vrot.slane %v1259_v59, 5  ;;  %v3143_v5 = vld [vmem:[%s4243_s4 + $0x68] sm:$0x1]  ;;  %v847_v6 = vshrl.u32 %v3141_v62, 16  ;;  %v850_v9 = vshll.u32 %v3141_v62, 16  ;;  %v856_v10 = vshll.u32 %v3142_v63, 16 }
  0xd1   : > { %v1246_v8 = vor.u32 %v1245_v37, %v1242_v60  ;;  %v860_v11 = vshrl.u32 %v3142_v63, 16  ;;  %v3165_v61 = vld [vmem:[%s4243_s4 + $0x60] sm:$0xe]  ;;  %v1256_v13 = vor.u32 %v1255_v3, %v1251_v1  ;;  %v866_v15 = vshll.u32 %v3143_v5, 16  ;;  %v3166_v16 = vld [vmem:[%s4243_s4 + $0x64] sm:$0xf] }
  0xd2   : > { %v849_v14 = vrot.slane %v847_v6, 4  ;;  %v3175_v17 = vrot.slane %v3165_v61, 9  ;;  %v3934_v2 = vld [vmem:[#allocation2 + $0x184] ss:$36 sps:$4 sm:$0xff]   ;;  %v852_v20 = vrot.slane %v850_v9, 5  ;;  %v858_v22 = vrot.slane %v856_v10, 5 }
  0xd3   : > { %v3936_v18 = vld [vmem:[#allocation2 + $0x180] ss:$36 sps:$4 sm:$0xff]   ;;  %v1247_v19 = vrot.slane %v1246_v8, 4  ;;  %v1257_v0 = vrot.slane %v1256_v13, 4  ;;  %v862_v23 = vrot.slane %v860_v11, 4  ;;  %2849 = vmatprep.mubr.bf16.mxu1 %v3934_v2  ;;  %v1001_v27 = vrot.slane %v3166_v16, 5 }
  0xd4   : > { %v3167_v24 = vld [vmem:[%s4243_s4 + $0x68] sm:$0x1]  ;;  %v1517_v25 = vld [vmem:[#allocation2 + $0x1c0] sm:$0xff]  ;;  %v3190_v29 = vld [vmem:[%s4243_s4 + $0x6c] sm:$0xf]  ;;  %2850 = vmatmul.mubr.bf16.gmra.mxu1 %v3936_v18  ;;  %v853_v33 = vor.u32 %v852_v20, %v849_v14  ;;  %v868_v35 = vrot.slane %v866_v15, 5 }
  0xd5   : > { %v1252_v26 = vsel %vm4270_vm5, %v1247_v19, %v1251_v1  ;;  %v1004_v28 = vrot.slane %v3167_v24, 5  ;;  %v1522_v30 = vld [vmem:[#allocation2 + $0x1e4] sm:$0xff]  ;;  %v1262_v32 = vsel %vm4270_vm5, %v1257_v0, %v1261_v4  ;;  %v863_v34 = vor.u32 %v862_v23, %v858_v22  ;;  %v3191_v36 = vld [vmem:[%s4243_s4 + $0x70] sm:$0xf]  ;;  %1069 = vst [vmem:[#allocation2 + $0x210] sm:$0xf] %v3190_v29 }
  0xd6   : > { %v3938_v31 = vld [vmem:[#allocation2 + $0x1c4] ss:$36 sps:$4 sm:$0xff]   ;;  %1315 = vst [vmem:[#allocation2 + $0x1cc] sm:$0xf] %v1252_v26  ;;  %1316 = vst [vmem:[#allocation2 + $0x1f0] sm:$0xf] %v1262_v32  ;;  %v3307_v38 = vcombine.low %v1517_v25, %v1522_v30  ;;  %v1002_v39 = vsel %vm4264_vm4, %v3175_v17, %v1001_v27 }
  0xd7   : > { %v1003_v40 = vrot.slane %v1001_v27, 4  ;;  %1070 = vst [vmem:[#allocation2 + $0x234] sm:$0xf] %v3191_v36  ;;  %v3213_v41 = vld [vmem:[%s4243_s4 + $0x6c] sm:$0xf]  ;;  %2760 = vmatprep.mubr.bf16.mxu0 %v3938_v31  ;;  %v854_v42 = vrot.slane %v853_v33, 4 }
  0xd8   : > { %v3214_v21 = vld [vmem:[%s4243_s4 + $0x70] sm:$0xf]  ;;  %v864_v43 = vrot.slane %v863_v34, 4  ;;  %1036 = vst [vmem:[#allocation2 + $0x20c] sm:$0xf] %v1002_v39  ;;  %v1264_v12 = vshrl.u32 %v3213_v41, 16  ;;  %2761 = vmatmul.mubr.bf16.gmra.mxu0 %v3307_v38 }
  0xd9   : > { %v3215_v44 = vld [vmem:[%s4243_s4 + $0x74] sm:$0x1]  ;;  %v1267_v45 = vshll.u32 %v3213_v41, 16  ;;  %v1005_v46 = vsel %vm4264_vm4, %v1003_v40, %v1004_v28  ;;  %v1273_v47 = vshll.u32 %v3214_v21, 16  ;;  %v1277_v48 = vshrl.u32 %v3214_v21, 16 }
  0xda   : > { %v1283_v50 = vshll.u32 %v3215_v44, 16  ;;  %v859_v52 = vsel %vm4270_vm5, %v854_v42, %v858_v22  ;;  %v869_v53 = vsel %vm4270_vm5, %v864_v43, %v868_v35  ;;  %1037 = vst [vmem:[#allocation2 + $0x230] sm:$0xf] %v1005_v46  ;;  %v1266_v54 = vrot.slane %v1264_v12, 4  ;;  %v3216_v56 = vld [vmem:[%s4243_s4 + $0x18] sm:$0xe] }
  0xdb   : > { %v1269_v55 = vrot.slane %v1267_v45, 5  ;;  %900 = vst [vmem:[#allocation2 + $0x208] sm:$0xf] %v859_v52  ;;  %901 = vst [vmem:[#allocation2 + $0x22c] sm:$0xf] %v869_v53  ;;  %v1275_v7 = vrot.slane %v1273_v47, 5 }
  0xdc   : > { %v1279_v57 = vrot.slane %v1277_v48, 4  ;;  %v3217_v58 = vld [vmem:[%s4243_s4 + $0x1c] sm:$0xf]  ;;  %v3240_v59 = vrot.slane %v3216_v56, 9  ;;  %v1285_v37 = vrot.slane %v1283_v50, 5 }
  0xdd   : > { %v1270_v60 = vor.u32 %v1269_v55, %v1266_v54  ;;  %v3218_v62 = vld [vmem:[%s4243_s4 + $0x20] sm:$0x1]  ;;  %v1369_v63 = vrot.slane %v3217_v58, 5  ;;  %v3228_v1 = vld [vmem:[%s4243_s4 + $0x48] sm:$0xe] }
  0xde   : > { %v1280_v3 = vor.u32 %v1279_v57, %v1275_v7  ;;  %v1372_v4 = vrot.slane %v3218_v62, 5  ;;  %v3229_v5 = vld [vmem:[%s4243_s4 + $0x4c] sm:$0xf]  ;;  %v3230_v6 = vld [vmem:[%s4243_s4 + $0x50] sm:$0x1]  ;;  %v3244_v14 = vrot.slane %v3228_v1, 9 }
  0xdf   : > { %v3940_v8 = vld [vmem:[#allocation2 + $0x1cc] ss:$36 sps:$4 sm:$0xff]   ;;  %v1271_v10 = vrot.slane %v1270_v60, 4  ;;  %v1370_v11 = vsel %vm4264_vm4, %v3240_v59, %v1369_v63  ;;  %v1371_v13 = vrot.slane %v1369_v63, 4  ;;  %v1397_v15 = vrot.slane %v3229_v5, 5 }
  0xe0   : > { %v3942_v9 = vld [vmem:[#allocation2 + $0x1c8] ss:$36 sps:$4 sm:$0xff]   ;;  %v1281_v61 = vrot.slane %v1280_v3, 4  ;;  %1439 = vst [vmem:[#allocation2 + $0x20] sm:$0xf] %v1370_v11  ;;  %2857 = vmatprep.mubr.bf16.mxu1 %v3940_v8  ;;  %v1400_v2 = vrot.slane %v3230_v6, 5 }
  0xe1   : > { %v3219_v16 = vld [vmem:[%s4243_s4 + $0x24] sm:$0xe]  ;;  %v1276_v17 = vsel %vm4270_vm5, %v1271_v10, %v1275_v7  ;;  %v3220_v18 = vld [vmem:[%s4243_s4 + $0x28] sm:$0xf]  ;;  %v3221_v19 = vld [vmem:[%s4243_s4 + $0x2c] sm:$0x1]  ;;  %2858 = vmatmul.mubr.bf16.gmra.mxu1 %v3942_v9  ;;  %v1373_v22 = vsel %vm4264_vm4, %v1371_v13, %v1372_v4  ;;  %v1398_v23 = vsel %vm4264_vm4, %v3244_v14, %v1397_v15 }
  0xe2   : > { %v3241_v0 = vrot.slane %v3219_v16, 9  ;;  %v1286_v20 = vsel %vm4270_vm5, %v1281_v61, %v1285_v37  ;;  %1317 = vst [vmem:[#allocation2 + $0x214] sm:$0xf] %v1276_v17  ;;  %v1399_v24 = vrot.slane %v1397_v15, 4  ;;  %v3231_v25 = vld [vmem:[%s4243_s4 + $0x54] sm:$0xe] }
  0xe3   : > { %v3232_v26 = vld [vmem:[%s4243_s4 + $0x58] sm:$0xf]  ;;  %v1527_v27 = vld [vmem:[#allocation2 + $0x208] sm:$0xff]  ;;  %1318 = vst [vmem:[#allocation2 + $0x238] sm:$0xf] %v1286_v20  ;;  %v1376_v51 = vrot.slane %v3220_v18, 5 }
  0xe4   : > { %v1532_v28 = vld [vmem:[#allocation2 + $0x22c] sm:$0xff]  ;;  %1440 = vst [vmem:[#allocation2 + $0x44] sm:$0xf] %v1373_v22  ;;  %1447 = vst [vmem:[#allocation2 + $0x140] sm:$0xf] %v1398_v23  ;;  %v1379_v30 = vrot.slane %v3221_v19, 5  ;;  %v1401_v32 = vsel %vm4264_vm4, %v1399_v24, %v1400_v2 }
  0xe5   : > { %v3944_v29 = vld [vmem:[#allocation2 + $0x20c] ss:$36 sps:$4 sm:$0xff]   ;;  %v3316_v31 = vcombine.low %v1527_v27, %v1532_v28  ;;  %v3233_v33 = vld [vmem:[%s4243_s4 + $0x5c] sm:$0x1]  ;;  %v3245_v34 = vrot.slane %v3231_v25, 9  ;;  %v1404_v35 = vrot.slane %v3232_v26, 5  ;;  %v1377_v38 = vsel %vm4264_vm4, %v3241_v0, %v1376_v51 }
  0xe6   : > { %v3222_v36 = vld [vmem:[%s4243_s4 + $0x30] sm:$0xe]  ;;  %2768 = vmatprep.mubr.bf16.mxu0 %v3944_v29  ;;  %1448 = vst [vmem:[#allocation2 + $0x164] sm:$0xf] %v1401_v32  ;;  %v1378_v39 = vrot.slane %v1376_v51, 4  ;;  %v1407_v40 = vrot.slane %v3233_v33, 5 }
  0xe7   : > { %v3223_v41 = vld [vmem:[%s4243_s4 + $0x34] sm:$0xf]  ;;  %v3224_v21 = vld [vmem:[%s4243_s4 + $0x38] sm:$0x1]  ;;  %2769 = vmatmul.mubr.bf16.gmra.mxu0 %v3316_v31  ;;  %1441 = vst [vmem:[#allocation2 + $0x68] sm:$0xf] %v1377_v38  ;;  %v1405_v42 = vsel %vm4264_vm4, %v3245_v34, %v1404_v35 }
  0xe8   : > { %v1406_v43 = vrot.slane %v1404_v35, 4  ;;  %v3242_v44 = vrot.slane %v3222_v36, 9  ;;  %v1383_v12 = vrot.slane %v3223_v41, 5  ;;  %v3234_v45 = vld [vmem:[%s4243_s4 + $0x60] sm:$0xe]  ;;  %v1380_v46 = vsel %vm4264_vm4, %v1378_v39, %v1379_v30 }
  0xe9   : > { %1449 = vst [vmem:[#allocation2 + $0x188] sm:$0xf] %v1405_v42  ;;  %v1386_v47 = vrot.slane %v3224_v21, 5  ;;  %v3235_v48 = vld [vmem:[%s4243_s4 + $0x64] sm:$0xf]  ;;  %v3246_v50 = vrot.slane %v3234_v45, 9 }
  0xea   : > { %1442 = vst [vmem:[#allocation2 + $0x8c] sm:$0xf] %v1380_v46  ;;  %v1408_v52 = vsel %vm4264_vm4, %v1406_v43, %v1407_v40  ;;  %v1384_v53 = vsel %vm4264_vm4, %v3242_v44, %v1383_v12  ;;  %v1385_v54 = vrot.slane %v1383_v12, 4  ;;  %v3236_v55 = vld [vmem:[%s4243_s4 + $0x68] sm:$0x1]  ;;  %v1411_v56 = vrot.slane %v3235_v48, 5 }
  0xeb   : > { %v3225_v7 = vld [vmem:[%s4243_s4 + $0x3c] sm:$0xe]  ;;  %1450 = vst [vmem:[#allocation2 + $0x1ac] sm:$0xf] %v1408_v52  ;;  %1443 = vst [vmem:[#allocation2 + $0xb0] sm:$0xf] %v1384_v53 }
  0xec   : > { %v1414_v57 = vrot.slane %v3236_v55, 5  ;;  %v3226_v58 = vld [vmem:[%s4243_s4 + $0x40] sm:$0xf]  ;;  %v3227_v59 = vld [vmem:[%s4243_s4 + $0x44] sm:$0x1]  ;;  %v1387_v62 = vsel %vm4264_vm4, %v1385_v54, %v1386_v47  ;;  %v1412_v63 = vsel %vm4264_vm4, %v3246_v50, %v1411_v56  ;;  %v1413_v1 = vrot.slane %v1411_v56, 4 }
  0xed   : > { %v3946_v60 = vld [vmem:[#allocation2 + $0x214] ss:$36 sps:$4 sm:$0xff]   ;;  %v3950_v3 = vld [vmem:[#allocation2 + $0x20] ss:$36 sps:$4 sm:$0xff]   ;;  %1444 = vst [vmem:[#allocation2 + $0xd4] sm:$0xf] %v1387_v62 }
  0xee   : > { %v3948_v37 = vld [vmem:[#allocation2 + $0x210] ss:$36 sps:$4 sm:$0xff]   ;;  %1451 = vst [vmem:[#allocation2 + $0x1d0] sm:$0xf] %v1412_v63  ;;  %2865 = vmatprep.mubr.bf16.mxu1 %v3946_v60  ;;  %v3951_v4 = vld [vmem:[#allocation2 + $0x140] ss:$36 sps:$4 sm:$0xff]   ;;  %v1415_v5 = vsel %vm4264_vm4, %v1413_v1, %v1414_v57  ;;  %3689 = vmatprep.mubr.bf16.mxu0 %v3950_v3 }
  0xef   : > { %v3243_v6 = vrot.slane %v3225_v7, 9  ;;  %v1390_v8 = vrot.slane %v3226_v58, 5  ;;  %2866 = vmatmul.mubr.bf16.gmra.mxu1 %v3948_v37  ;;  %1452 = vst [vmem:[#allocation2 + $0x1f4] sm:$0xf] %v1415_v5  ;;  %v1393_v9 = vrot.slane %v3227_v59, 5 }
  0xf0   : > { %v3237_v10 = vld [vmem:[%s4243_s4 + $0x6c] sm:$0xe]  ;;  %3697 = vmatprep.mubr.bf16.mxu1 %v3951_v4  ;;  %v3238_v13 = vld [vmem:[%s4243_s4 + $0x70] sm:$0xf]  ;;  %v3239_v16 = vld [vmem:[%s4243_s4 + $0x74] sm:$0x1] }
  0xf1   : > { %v1391_v11 = vsel %vm4264_vm4, %v3243_v6, %v1390_v8  ;;  %v1392_v61 = vrot.slane %v1390_v8, 4  ;;  %v3247_v14 = vrot.slane %v3237_v10, 9  ;;  %v3952_v15 = vld [vmem:[#allocation2 + $0x68] ss:$36 sps:$4 sm:$0xff]   ;;  %v1418_v18 = vrot.slane %v3238_v13, 5  ;;  %s3962_s4 = sshll.u32 %s4052_s20, 4  ;;  %s3963_s4 = int_to_ptr.vmem [resolvable:$false] %s3962_s4 }
  0xf2   : > { %1445 = vst [vmem:[#allocation2 + $0xf8] sm:$0xf] %v1391_v11  ;;  %3690 = vmatmul.mubr.bf16.vlgmr.msra.gmra.mxu0 %v3952_v15  ;;  %v3953_v2 = vld [vmem:[#allocation2 + $0x188] ss:$36 sps:$4 sm:$0xff]   ;;  %v1421_v19 = vrot.slane %v3239_v16, 5  ;;  %s3964_s21 = scalar_lea.vmem %s3963_s4, 4096  ;;  %p3965_p4 = scmp.lt.s32.totalorder %s5016_s29, %s3963_s4 }
  0xf3   : > { %v1394_v17 = vsel %vm4264_vm4, %v1392_v61, %v1393_v9  ;;  %v1419_v20 = vsel %vm4264_vm4, %v3247_v14, %v1418_v18  ;;  %v1420_v22 = vrot.slane %v1418_v18, 4  ;;  %v4818_v30 = vld [vmem:[%s5075_s2] ss:$0 sm:$0xff]  ;;  %p3966_p5 = scmp.lt.s32.totalorder %s3964_s21, %s3958_s11 }
  0xf4   : > { %1446 = vst [vmem:[#allocation2 + $0x11c] sm:$0xf] %v1394_v17  ;;  %v3954_v0 = vld [vmem:[#allocation2 + $0xb0] ss:$36 sps:$4 sm:$0xff]   ;;  %1453 = vst [vmem:[#allocation2 + $0x218] sm:$0xf] %v1419_v20 }
  0xf5   : > { %3693 = vmatprep.mubr.bf16.mxu0 %v3954_v0  ;;  %v1422_v24 = vsel %vm4264_vm4, %v1420_v22, %v1421_v19  ;;  %p3967_p6 = por %p3966_p5, %p3965_p4 }
  0xf6   : > { %v3955_v23 = vld [vmem:[#allocation2 + $0x1d0] ss:$36 sps:$4 sm:$0xff]   ;;  %1454 = vst [vmem:[#allocation2 + $0x23c] sm:$0xf] %v1422_v24 }
  0xf7   : > { %3698 = vmatmul.mubr.bf16.vlgmr.msra.gmra.mxu1 %v3953_v2  ;;  %p3968_p7 = pnand %p3967_p6, %p3961_p2 }
  0xf8   : > { %3701 = vmatprep.mubr.bf16.mxu1 %v3955_v23 }
  0xf9   : > { %v3481_v27 = vpop.f32.mrf.mxu1  ;;  %v3417_v28 = vpop.f32.mrf.mxu0 }
  0xfb   : > { %v3956_v25 = vld [vmem:[#allocation2 + $0xf8] ss:$36 sps:$4 sm:$0xff]   ;;  %v3482_v29 = vpop.f32.mrf.mxu1  ;;  %v3418_v31 = vpop.f32.mrf.mxu0 }
  0xfc   : > { %3694 = vmatmul.mubr.bf16.gmra.mxu0 %v3956_v25  ;;  %v3483_v51 = vadd.f32 %v3482_v29, %v3481_v27  ;;  %v3419_v33 = vadd.f32 %v3418_v31, %v3417_v28 }
  0xfd   : > { %v3957_v26 = vld [vmem:[#allocation2 + $0x218] ss:$36 sps:$4 sm:$0xff]   ;;  %v3484_v32 = vpop.f32.mrf.mxu1  ;;  %v3420_v49 = vpop.f32.mrf.mxu0 }
  0xfe   : > { %v2521_v35 = vadd.f32 %v3419_v33, %v4818_v30 }
  0xff   : > { %3702 = vmatmul.mubr.bf16.gmra.mxu1 %v3957_v26  ;;  %v3485_v34 = vpop.f32.mrf.mxu1  ;;  %v3421_v38 = vpop.f32.mrf.mxu0 }
 0x100   : > { %v3486_v36 = vadd.f32 %v3485_v34, %v3484_v32  ;;  %v4821_v39 = vadd.f32 %v3483_v51, %v2521_v35  ;;  %v3422_v40 = vadd.f32 %v3421_v38, %v3420_v49 }
 0x101   : > { %v3487_v42 = vpop.f32.mrf.mxu1 }
 0x102   : > { %v2524_v41 = vadd.f32 %v3422_v40, %v4818_v30  ;;  %v3423_v21 = vpop.f32.mrf.mxu0 }
 0x103   : > { %v3488_v45 = vpop.f32.mrf.mxu1 }
 0x104   : > { %v4824_v43 = vadd.f32 %v3486_v36, %v2524_v41  ;;  %v3424_v44 = vpop.f32.mrf.mxu0  ;;  %v3489_v46 = vadd.f32 %v3488_v45, %v3487_v42 }
 0x105   : > { %v3425_v12 = vadd.f32 %v3424_v44, %v3423_v21  ;;  %v3490_v50 = vpop.f32.mrf.mxu1 }
 0x106   : > { %v3426_v47 = vpop.f32.mrf.mxu0 }
 0x107   : > { %v2529_v48 = vadd.f32 %v3425_v12, %v4818_v30  ;;  %v3491_v55 = vpop.f32.mrf.mxu1 }
 0x108   : > { %v3427_v52 = vpop.f32.mrf.mxu0  ;;  %v3492_v56 = vadd.f32 %v3491_v55, %v3490_v50 }
 0x109   : > { %v4827_v53 = vadd.f32 %v3489_v46, %v2529_v48  ;;  %v3428_v54 = vadd.f32 %v3427_v52, %v3426_v47  ;;  %v3493_v57 = vpop.f32.mrf.mxu1 }
 0x10b   : > { %v2532_v7 = vadd.f32 %v3428_v54, %v4818_v30  ;;  %v3494_v60 = vpop.f32.mrf.mxu1 }
 0x10c   : > { %v3429_v59 = vpop.f32.mrf.mxu0  ;;  %v3495_v62 = vadd.f32 %v3494_v60, %v3493_v57 }
 0x10d   : > { %v4830_v58 = vadd.f32 %v3492_v56, %v2532_v7  ;;  %v3496_v1 = vpop.f32.mrf.mxu1 }
 0x10e   : > { %v3430_v37 = vpop.f32.mrf.mxu0 }
 0x10f   : > { %v3431_v63 = vadd.f32 %v3430_v37, %v3429_v59  ;;  %v3497_v5 = vpop.f32.mrf.mxu1 }
 0x110   : > { %v3432_v3 = vpop.f32.mrf.mxu0  ;;  %v3498_v8 = vadd.f32 %v3497_v5, %v3496_v1 }
 0x111   : > { %v2537_v4 = vadd.f32 %v3431_v63, %v4818_v30 }
 0x112   : > { %v3433_v6 = vpop.f32.mrf.mxu0 }
 0x113   : > { %v4833_v9 = vadd.f32 %v3495_v62, %v2537_v4  ;;  %v3434_v10 = vadd.f32 %v3433_v6, %v3432_v3  ;;  %v3499_v61 = vpop.f32.mrf.mxu1 }
 0x115   : > { %v2540_v11 = vadd.f32 %v3434_v10, %v4818_v30  ;;  %v3500_v15 = vpop.f32.mrf.mxu1 }
 0x116   : > { %v3501_v16 = vadd.f32 %v3500_v15, %v3499_v61 }
 0x117   : > { %v4836_v13 = vadd.f32 %v3498_v8, %v2540_v11  ;;  %v3435_v14 = vpop.f32.mrf.mxu0  ;;  %v3502_v2 = vpop.f32.mrf.mxu1 }
 0x119   : > { %5083 = vst [vmem:[#allocation6_spill] sm:$0xff] %v4836_v13  ;;  %v3436_v17 = vpop.f32.mrf.mxu0  ;;  %v3503_v0 = vpop.f32.mrf.mxu1 }
 0x11a   : > { %v3437_v18 = vadd.f32 %v3436_v17, %v3435_v14  ;;  %v3504_v22 = vadd.f32 %v3503_v0, %v3502_v2 }
 0x11b   : > { %v3438_v19 = vpop.f32.mrf.mxu0 }
 0x11c   : > { %v2545_v20 = vadd.f32 %v3437_v18, %v4818_v30 }
 0x11d   : > { %v3439_v23 = vpop.f32.mrf.mxu0 }
 0x11e   : > { %v4839_v24 = vadd.f32 %v3501_v16, %v2545_v20  ;;  %v3440_v25 = vadd.f32 %v3439_v23, %v3438_v19 }
 0x11f   : > { %v3505_v29 = vpop.f32.mrf.mxu1 }
 0x120   : > { %v2548_v26 = vadd.f32 %v3440_v25, %v4818_v30 }
 0x121   : > { %v3506_v32 = vpop.f32.mrf.mxu1 }
 0x122   : > { %v4842_v27 = vadd.f32 %v3504_v22, %v2548_v26  ;;  %v3441_v28 = vpop.f32.mrf.mxu0  ;;  %v3507_v33 = vadd.f32 %v3506_v32, %v3505_v29 }
 0x123   : > { %v3508_v35 = vpop.f32.mrf.mxu1 }
 0x124   : > { %5084 = vst [vmem:[#allocation7_spill] sm:$0xff] %v4842_v27  ;;  %v3442_v51 = vpop.f32.mrf.mxu0 }
 0x125   : > { %v3443_v31 = vadd.f32 %v3442_v51, %v3441_v28  ;;  %v3509_v41 = vpop.f32.mrf.mxu1 }
 0x126   : > { %v3444_v49 = vpop.f32.mrf.mxu0  ;;  %v3510_v21 = vadd.f32 %v3509_v41, %v3508_v35 }
 0x127   : > { %v2553_v34 = vadd.f32 %v3443_v31, %v4818_v30 }
 0x128   : > { %v3445_v36 = vpop.f32.mrf.mxu0 }
 0x129   : > { %v4845_v38 = vadd.f32 %v3507_v33, %v2553_v34  ;;  %v3446_v40 = vadd.f32 %v3445_v36, %v3444_v49  ;;  %v3511_v44 = vpop.f32.mrf.mxu1 }
 0x12b   : > { %v2556_v42 = vadd.f32 %v3446_v40, %v4818_v30  ;;  %v3512_v46 = vpop.f32.mrf.mxu1 }
 0x12c   : > { %v3513_v47 = vadd.f32 %v3512_v46, %v3511_v44 }
 0x12d   : > { %v4848_v12 = vadd.f32 %v3510_v21, %v2556_v42  ;;  %v3447_v45 = vpop.f32.mrf.mxu0  ;;  %v3514_v50 = vpop.f32.mrf.mxu1 }
 0x12f   : > { %v3448_v48 = vpop.f32.mrf.mxu0  ;;  %v3515_v55 = vpop.f32.mrf.mxu1 }
 0x130   : > { %v3449_v52 = vadd.f32 %v3448_v48, %v3447_v45  ;;  %v3516_v7 = vadd.f32 %v3515_v55, %v3514_v50 }
 0x131   : > { %v3450_v54 = vpop.f32.mrf.mxu0 }
 0x132   : > { %v2561_v56 = vadd.f32 %v3449_v52, %v4818_v30 }
 0x133   : > { %v3451_v57 = vpop.f32.mrf.mxu0  ;;  %v3517_v62 = vpop.f32.mrf.mxu1 }
 0x134   : > { %v4851_v59 = vadd.f32 %v3513_v47, %v2561_v56  ;;  %v3452_v60 = vadd.f32 %v3451_v57, %v3450_v54 }
 0x135   : > { %v3518_v3 = vpop.f32.mrf.mxu1 }
 0x136   : > { %v2564_v37 = vadd.f32 %v3452_v60, %v4818_v30  ;;  %v3519_v4 = vadd.f32 %v3518_v3, %v3517_v62 }
 0x137   : > { %v3453_v1 = vpop.f32.mrf.mxu0  ;;  %v3520_v6 = vpop.f32.mrf.mxu1 }
 0x138   : > { %v4854_v63 = vadd.f32 %v3516_v7, %v2564_v37 }
 0x139   : > { %v3454_v5 = vpop.f32.mrf.mxu0  ;;  %v3521_v11 = vpop.f32.mrf.mxu1 }
 0x13a   : > { %v3455_v8 = vadd.f32 %v3454_v5, %v3453_v1  ;;  %v3522_v14 = vadd.f32 %v3521_v11, %v3520_v6 }
 0x13b   : > { %v3456_v10 = vpop.f32.mrf.mxu0 }
 0x13c   : > { %v2569_v61 = vadd.f32 %v3455_v8, %v4818_v30 }
 0x13d   : > { %v3457_v15 = vpop.f32.mrf.mxu0 }
 0x13e   : > { %v4857_v16 = vadd.f32 %v3519_v4, %v2569_v61  ;;  %v3458_v17 = vadd.f32 %v3457_v15, %v3456_v10 }
 0x13f   : > { %v3523_v0 = vpop.f32.mrf.mxu1 }
 0x140   : > { %5085 = vst [vmem:[#allocation8_spill] sm:$0xff] %v4857_v16  ;;  %v2572_v2 = vadd.f32 %v3458_v17, %v4818_v30 }
 0x141   : > { %v3524_v23 = vpop.f32.mrf.mxu1 }
 0x142   : > { %v4860_v18 = vadd.f32 %v3522_v14, %v2572_v2  ;;  %v3459_v19 = vpop.f32.mrf.mxu0  ;;  %v3525_v25 = vadd.f32 %v3524_v23, %v3523_v0 }
 0x143   : > { %v3526_v29 = vpop.f32.mrf.mxu1 }
 0x144   : > { %5086 = vst [vmem:[#allocation9_spill] sm:$0xff] %v4860_v18  ;;  %v3460_v20 = vpop.f32.mrf.mxu0 }
 0x145   : > { %v3461_v22 = vadd.f32 %v3460_v20, %v3459_v19  ;;  %v3527_v33 = vpop.f32.mrf.mxu1 }
 0x146   : > { %v3462_v26 = vpop.f32.mrf.mxu0  ;;  %v3528_v49 = vadd.f32 %v3527_v33, %v3526_v29 }
 0x147   : > { %v2577_v28 = vadd.f32 %v3461_v22, %v4818_v30 }
 0x148   : > { %v3463_v51 = vpop.f32.mrf.mxu0 }
 0x149   : > { %v4863_v31 = vadd.f32 %v3525_v25, %v2577_v28  ;;  %v3464_v32 = vadd.f32 %v3463_v51, %v3462_v26 }
 0x14b   : > { %5087 = vst [vmem:[#allocation10_spill] sm:$0xff] %v4863_v31  ;;  %v2580_v34 = vadd.f32 %v3464_v32, %v4818_v30 }
 0x14c   : > { %v3545_v36 = vpop.f32.mrf.mxu0 }
 0x14d   : > { %v4866_v35 = vadd.f32 %v3528_v49, %v2580_v34 }
 0x14e   : > { %v3546_v40 = vpop.f32.mrf.mxu0 }
 0x14f   : > { %5088 = vst [vmem:[#allocation11_spill] sm:$0xff] %v4866_v35 }
 0x150   : > { %v3548_v41 = vpop.f32.mrf.mxu0 }
 0x152   : > { %v3549_v21 = vpop.f32.mrf.mxu0 }
 0x154   : > { %v4868_v42 = vpop.f32.mrf.mxu1 }
 0x156   : > { %v4870_v44 = vpop.f32.mrf.mxu1 }
 0x158   : > { %v4872_v46 = vpop.f32.mrf.mxu1 }
 0x159   : > { %v3551_v45 = vpop.f32.mrf.mxu0 }
 0x15a   : > { %v4874_v48 = vpop.f32.mrf.mxu1 }
 0x15b   : > { %v3552_v47 = vpop.f32.mrf.mxu0 }
 0x15c   : > { %v3553_v31 = vadd.f32 %v3552_v47, %v3551_v45  ;;  %v3614_v47 = vadd.f32 %v4874_v48, %v4872_v46 }
 0x15d   : > { %v3554_v50 = vpop.f32.mrf.mxu0 }
 0x15f   : > { %v3555_v54 = vpop.f32.mrf.mxu0 }
 0x160   : > { %v3615_v52 = vpop.f32.mrf.mxu1 }
 0x162   : > { %v3616_v30 = vpop.f32.mrf.mxu1 }
 0x164   : > { %v4876_v55 = vpop.f32.mrf.mxu1 }
 0x165   : > { %v4878_v56 = vpop.f32.mrf.mxu0 }
 0x166   : > { %v4882_v57 = vpop.f32.mrf.mxu1 }
 0x167   : > { %v4880_v7 = vpop.f32.mrf.mxu0 }
 0x169   : > { %v4884_v60 = vpop.f32.mrf.mxu0 }
 0x16b   : > { %v4886_v37 = vpop.f32.mrf.mxu0 }
 0x16d   : > { %v4888_v62 = vpop.f32.mrf.mxu1 }
 0x16e   : > { %5089 = vst [vmem:[#allocation12_spill] sm:$0xff] %v4888_v62  ;;  %v3547_v62 = vadd.f32 %v3546_v40, %v3545_v36  ;;  %v3611_v36 = vadd.f32 %v4870_v44, %v4868_v42 }
 0x16f   : > { %v4890_v1 = vpop.f32.mrf.mxu1 }
 0x170   : > { %5090 = vst [vmem:[#allocation13_spill] sm:$0xff] %v4890_v1 }
 0x171   : > { %v4892_v4 = vpop.f32.mrf.mxu1 }
 0x172   : > { %v3563_v3 = vpop.f32.mrf.mxu0  ;;  %5091 = vst [vmem:[#allocation14_spill] sm:$0xff] %v4892_v4 }
 0x173   : > { %v4894_v6 = vpop.f32.mrf.mxu1 }
 0x174   : > { %v3564_v5 = vpop.f32.mrf.mxu0  ;;  %5092 = vst [vmem:[#allocation15_spill] sm:$0xff] %v4894_v6 }
 0x176   : > { %v4896_v8 = vpop.f32.mrf.mxu0 }
 0x178   : > { %v4900_v11 = vpop.f32.mrf.mxu0 }
 0x17a   : > { %v4898_v10 = vpop.f32.mrf.mxu1 }
 0x17c   : > { %v4902_v61 = vpop.f32.mrf.mxu1 }
 0x17d   : > { %5093 = vst [vmem:[#allocation16_spill] sm:$0xff] %v4902_v61  ;;  %v3617_v61 = vadd.f32 %v3616_v30, %v3615_v52 }
 0x17e   : > { %v4904_v14 = vpop.f32.mrf.mxu1 }
 0x17f   : > { %5094 = vst [vmem:[#allocation17_spill] sm:$0xff] %v4904_v14 }
 0x180   : > { %v4906_v2 = vpop.f32.mrf.mxu1 }
 0x181   : > { %v3569_v15 = vpop.f32.mrf.mxu0  ;;  %5095 = vst [vmem:[#allocation18_spill] sm:$0xff] %v4906_v2 }
 0x183   : > { %v3570_v17 = vpop.f32.mrf.mxu0 }
 0x185   : > { %v3572_v19 = vpop.f32.mrf.mxu0 }
 0x187   : > { %v3573_v0 = vpop.f32.mrf.mxu0 }
 0x188   : > { %v3633_v20 = vpop.f32.mrf.mxu1  ;;  %v3574_v52 = vadd.f32 %v3573_v0, %v3572_v19  ;;  %v5105_v19 = vld [vmem:[#allocation16_spill] sm:$0xff] }
 0x18a   : > { %v3634_v22 = vpop.f32.mrf.mxu1 }
 0x18b   : > { %v3635_v30 = vadd.f32 %v3634_v22, %v3633_v20 }
 0x18c   : > { %v4908_v25 = vpop.f32.mrf.mxu1 }
 0x18d   : > { %v3575_v23 = vpop.f32.mrf.mxu0  ;;  %5096 = vst [vmem:[#allocation19_spill] sm:$0xff] %v4908_v25 }
 0x18e   : > { %v4910_v28 = vpop.f32.mrf.mxu1 }
 0x18f   : > { %v3576_v26 = vpop.f32.mrf.mxu0  ;;  %5097 = vst [vmem:[#allocation20_spill] sm:$0xff] %v4910_v28 }
 0x190   : > { %v3577_v28 = vadd.f32 %v3576_v26, %v3575_v23 }
 0x191   : > { %v3578_v29 = vpop.f32.mrf.mxu0 }
 0x193   : > { %v3579_v51 = vpop.f32.mrf.mxu0 }
 0x194   : > { %v3639_v32 = vpop.f32.mrf.mxu1 }
 0x196   : > { %v3640_v33 = vpop.f32.mrf.mxu1 }
 0x198   : > { %v4912_v49 = vpop.f32.mrf.mxu0  ;;  %v3642_v34 = vpop.f32.mrf.mxu1 }
 0x199   : > { %5098 = vst [vmem:[#allocation21_spill] sm:$0xff] %v4912_v49 }
 0x19a   : > { %v4914_v18 = vpop.f32.mrf.mxu0  ;;  %v3643_v35 = vpop.f32.mrf.mxu1 }
 0x19b   : > { %5099 = vst [vmem:[#allocation22_spill] sm:$0xff] %v4914_v18  ;;  %v3550_v18 = vadd.f32 %v3549_v21, %v3548_v41  ;;  %v3580_v21 = vadd.f32 %v3579_v51, %v3578_v29  ;;  %v5112_v29 = vld [vmem:[#allocation7_spill] sm:$0xff] }
 0x19c   : > { %v4916_v6 = vpop.f32.mrf.mxu0 }
 0x19d   : > { %5100 = vst [vmem:[#allocation23_spill] sm:$0xff] %v4916_v6  ;;  %v2723_v6 = vadd.f32 %v3553_v31, %v4827_v53  ;;  %v2718_v40 = vadd.f32 %v3550_v18, %v4824_v43  ;;  %v2755_v31 = vadd.f32 %v3577_v28, %v4851_v59  ;;  %v3620_v43 = vadd.f32 %v4882_v57, %v4876_v55  ;;  %v5110_v28 = vld [vmem:[#allocation12_spill] sm:$0xff] }
 0x19e   : > { %v4920_v16 = vpop.f32.mrf.mxu0  ;;  %v3641_v18 = vadd.f32 %v3640_v33, %v3639_v32  ;;  %v3559_v59 = vadd.f32 %v4880_v7, %v4878_v56  ;;  %v3568_v56 = vadd.f32 %v4900_v11, %v4896_v8  ;;  %v2750_v7 = vadd.f32 %v3574_v52, %v4848_v12  ;;  %v5106_v11 = vld [vmem:[#allocation19_spill] sm:$0xff]  ;;  %v5107_v12 = vld [vmem:[#allocation20_spill] sm:$0xff]  ;;  %v5113_v33 = vld [vmem:[#allocation10_spill] sm:$0xff] }
 0x19f   : > { %5102 = vst [vmem:[#allocation25_spill] sm:$0xff] %v4920_v16  ;;  %v3571_v16 = vadd.f32 %v3570_v17, %v3569_v15  ;;  %v2820_v45 = vadd.f32 %v3617_v61, %v2723_v6  ;;  %v2815_v48 = vadd.f32 %v3614_v47, %v2718_v40  ;;  %v3644_v6 = vadd.f32 %v3643_v35, %v3642_v34  ;;  %v5115_v47 = vld [vmem:[#allocation17_spill] sm:$0xff] }
 0x1a0   : > { %v2731_v17 = vadd.f32 %v3559_v59, %v4833_v9  ;;  %v3629_v8 = vadd.f32 %v5105_v19, %v4898_v10  ;;  %v3638_v0 = vadd.f32 %v5107_v12, %v5106_v11  ;;  %v5108_v35 = vld [vmem:[#allocation21_spill] sm:$0xff]  ;;  %v2742_v10 = vadd.f32 %v3568_v56, %v5112_v29 }
 0x1a1   : > { %v4918_v4 = vpop.f32.mrf.mxu1 }
 0x1a2   : > { %5101 = vst [vmem:[#allocation24_spill] sm:$0xff] %v4918_v4  ;;  %v3556_v4 = vadd.f32 %v3555_v54, %v3554_v50  ;;  %v2747_v50 = vadd.f32 %v3571_v16, %v4845_v38  ;;  %v2758_v38 = vadd.f32 %v3580_v21, %v4854_v63  ;;  %v2852_v16 = vadd.f32 %v3641_v18, %v2755_v31  ;;  %v5114_v21 = vld [vmem:[#allocation6_spill] sm:$0xff]  ;;  %v5117_v18 = vld [vmem:[#allocation8_spill] sm:$0xff] }
 0x1a3   : > { %v4922_v2 = vpop.f32.mrf.mxu1 }
 0x1a4   : > { %5103 = vst [vmem:[#allocation26_spill] sm:$0xff] %v4922_v2  ;;  %v2726_v53 = vadd.f32 %v3556_v4, %v4830_v58  ;;  %v2855_v9 = vadd.f32 %v3644_v6, %v2758_v38  ;;  %v5121_v38 = vld [vmem:[#allocation15_spill] sm:$0xff] }
 0x1a5   : > { %v4924_v14 = vpop.f32.mrf.mxu1 }
 0x1a6   : > { %5104 = vst [vmem:[#allocation27_spill] sm:$0xff] %v4924_v14  ;;  %v2715_v14 = vadd.f32 %v3547_v62, %v4821_v39  ;;  %v3565_v39 = vadd.f32 %v3564_v5, %v3563_v3  ;;  %v2823_v57 = vadd.f32 %v3620_v43, %v2726_v53  ;;  %v2844_v5 = vadd.f32 %v3635_v30, %v2747_v50 }
 0x1a7   : > { %v3587_v13 = vpop.f32.mrf.mxu0  ;;  %v4926_v1 = vpop.f32.mrf.mxu1  ;;  %v2847_v53 = vadd.f32 %v3638_v0, %v2750_v7 }
 0x1a8   : > { %v2812_v58 = vadd.f32 %v3611_v36, %v2715_v14  ;;  %v2739_v3 = vadd.f32 %v3565_v39, %v4839_v24  ;;  %v3562_v24 = vadd.f32 %v4886_v37, %v4884_v60  ;;  %v5111_v60 = vld [vmem:[#allocation13_spill] sm:$0xff]  ;;  %v5116_v39 = vld [vmem:[#allocation18_spill] sm:$0xff] }
 0x1a9   : > { %v3588_v27 = vpop.f32.mrf.mxu0  ;;  %v3623_v37 = vadd.f32 %v5111_v60, %v5110_v28  ;;  %v3632_v50 = vadd.f32 %v5116_v39, %v5115_v47 }
 0x1aa   : > { %v3589_v61 = vadd.f32 %v3588_v27, %v3587_v13  ;;  %v5109_v13 = vld [vmem:[#allocation22_spill] sm:$0xff]  ;;  %v2836_v32 = vadd.f32 %v3629_v8, %v2739_v3  ;;  %v5122_v3 = vld [vmem:[#allocation24_spill] sm:$0xff] }
 0x1ab   : > { %v4928_v49 = vpop.f32.mrf.mxu0  ;;  %v3583_v27 = vadd.f32 %v5109_v13, %v5108_v35  ;;  %v2828_v43 = vadd.f32 %v3623_v37, %v2731_v17  ;;  %v5123_v56 = vld [vmem:[#allocation26_spill] sm:$0xff] }
 0x1ac   : > { %v2771_v34 = vadd.f32 %v3589_v61, %v5113_v33  ;;  %v3647_v7 = vadd.f32 %v5123_v56, %v5122_v3 }
 0x1ad   : > { %v3591_v2 = vpop.f32.mrf.mxu0  ;;  %v5126_v0 = vld [vmem:[#allocation27_spill] sm:$0xff] }
 0x1ae   : > { %v3592_v36 = vadd.f32 %v3591_v2, %v4928_v49  ;;  %v5118_v2 = vld [vmem:[#allocation23_spill] sm:$0xff]  ;;  %v5119_v49 = vld [vmem:[#allocation25_spill] sm:$0xff] }
 0x1af   : > { %v4932_v25 = vpop.f32.mrf.mxu1 }
 0x1b1   : > { %v4940_v41 = vpop.f32.mrf.mxu1 }
 0x1b2   : > { %v3691_v42 = vpop.f32.mrf.mxu0  ;;  %v3653_v59 = vadd.f32 %v4940_v41, %v4932_v25 }
 0x1b3   : > { %v4947_v54 = vpop.f32.mrf.mxu1  ;;  %v2917_v44 = vadd.f32 %v3691_v42, %v2820_v45  ;;  %v2734_v45 = vadd.f32 %v3562_v24, %v5114_v21 }
 0x1b4   : > { %v2908_v46 = vpop.f32.mrf.mxu0  ;;  %v2868_v25 = vadd.f32 %v3653_v59, %v2771_v34 }
 0x1b5   : > { %v4953_v62 = vpop.f32.mrf.mxu1  ;;  %2973 = vst [vmem:[%s4956_s6 + $0x10] sm:$0xff] %v2917_v44  ;;  %v2909_v55 = vadd.f32 %v2908_v46, %v2812_v58  ;;  %v2763_v44 = vadd.f32 %v3583_v27, %v5117_v18  ;;  %v3586_v58 = vadd.f32 %v5119_v49, %v5118_v2 }
 0x1b6   : > { %v3692_v63 = vpop.f32.mrf.mxu0  ;;  %v3656_v17 = vadd.f32 %v4953_v62, %v4947_v54 }
 0x1b7   : > { %v3699_v4 = vpop.f32.mrf.mxu1  ;;  %2971 = vst [vmem:[%s4956_s6] sm:$0xff] %v2909_v55  ;;  %v2920_v15 = vadd.f32 %v3692_v63, %v2823_v57  ;;  %v2839_v57 = vadd.f32 %v3632_v50, %v2742_v10  ;;  %v2860_v19 = vadd.f32 %v3647_v7, %v2763_v44 }
 0x1b8   : > { %v2949_v14 = vadd.f32 %v3699_v4, %v2852_v16  ;;  %v2911_v22 = vpop.f32.mrf.mxu0  ;;  %v5124_v4 = vld [vmem:[#allocation11_spill] sm:$0xff] }
 0x1b9   : > { %v2940_v20 = vpop.f32.mrf.mxu1  ;;  %2974 = vst [vmem:[%s4956_s6 + $0x18] sm:$0xff] %v2920_v15  ;;  %v2912_v26 = vadd.f32 %v2911_v22, %v2815_v48  ;;  %v5120_v48 = vld [vmem:[#allocation14_spill] sm:$0xff] }
 0x1ba   : > { %2981 = vst [vmem:[%s4956_s6 + $0x50] sm:$0xff] %v2949_v14  ;;  %v2941_v23 = vadd.f32 %v2940_v20, %v2844_v5  ;;  %v3626_v16 = vadd.f32 %v5121_v38, %v5120_v48  ;;  %v2774_v5 = vadd.f32 %v3592_v36, %v5124_v4  ;;  %v5125_v14 = vld [vmem:[#allocation9_spill] sm:$0xff]  ;;  %v3650_v20 = vadd.f32 %v4926_v1, %v5126_v0 }
 0x1bb   : > { %v3700_v51 = vpop.f32.mrf.mxu1  ;;  %2972 = vst [vmem:[%s4956_s6 + $0x8] sm:$0xff] %v2912_v26  ;;  %v2766_v15 = vadd.f32 %v3586_v58, %v5125_v14 }
 0x1bc   : > { %2979 = vst [vmem:[%s4956_s6 + $0x40] sm:$0xff] %v2941_v23  ;;  %v2952_v40 = vadd.f32 %v3700_v51, %v2855_v9  ;;  %v3695_v31 = vpop.f32.mrf.mxu0  ;;  %v2831_v61 = vadd.f32 %v3626_v16, %v2734_v45  ;;  %v2871_v35 = vadd.f32 %v3656_v17, %v2774_v5 }
 0x1bd   : > { %v2943_v52 = vpop.f32.mrf.mxu1  ;;  %v2933_v42 = vadd.f32 %v3695_v31, %v2836_v32  ;;  %v2863_v62 = vadd.f32 %v3650_v20, %v2766_v15 }
 0x1be   : > { %2982 = vst [vmem:[%s4956_s6 + $0x58] sm:$0xff] %v2952_v40  ;;  %v2944_v30 = vadd.f32 %v2943_v52, %v2847_v53  ;;  %v2924_v46 = vpop.f32.mrf.mxu0 }
 0x1bf   : > { %2977 = vst [vmem:[%s4956_s6 + $0x30] sm:$0xff] %v2933_v42  ;;  %v2925_v55 = vadd.f32 %v2924_v46, %v2828_v43  ;;  %v3703_v63 = vpop.f32.mrf.mxu1 }
 0x1c0   : > { %2980 = vst [vmem:[%s4956_s6 + $0x48] sm:$0xff] %v2944_v30  ;;  %v3696_v41 = vpop.f32.mrf.mxu0  ;;  %v2965_v24 = vadd.f32 %v3703_v63, %v2868_v25 }
 0x1c1   : > { %2975 = vst [vmem:[%s4956_s6 + $0x20] sm:$0xff] %v2925_v55  ;;  %v2936_v6 = vadd.f32 %v3696_v41, %v2839_v57  ;;  %v2956_v11 = vpop.f32.mrf.mxu1 }
 0x1c2   : > { %v2927_v8 = vpop.f32.mrf.mxu0  ;;  %2985 = vst [vmem:[%s4956_s6 + $0x70] sm:$0xff] %v2965_v24  ;;  %v2957_v22 = vadd.f32 %v2956_v11, %v2860_v19 }
 0x1c3   : > { %2978 = vst [vmem:[%s4956_s6 + $0x38] sm:$0xff] %v2936_v6  ;;  %v2928_v12 = vadd.f32 %v2927_v8, %v2831_v61  ;;  %v3704_v13 = vpop.f32.mrf.mxu1 }
 0x1c4   : > { %2983 = vst [vmem:[%s4956_s6 + $0x60] sm:$0xff] %v2957_v22  ;;  %v2968_v54 = vadd.f32 %v3704_v13, %v2871_v35 }
 0x1c5   : > { %2976 = vst [vmem:[%s4956_s6 + $0x28] sm:$0xff] %v2928_v12  ;;  %v2959_v27 = vpop.f32.mrf.mxu1 }
 0x1c6   : > { %2986 = vst [vmem:[%s4956_s6 + $0x78] sm:$0xff] %v2968_v54  ;;  %v2960_v1 = vadd.f32 %v2959_v27, %v2863_v62 }
 0x1c8   : > { %2984 = vst [vmem:[%s4956_s6 + $0x68] sm:$0xff] %v2960_v1 }
 0x1c9   : > { %3971 = shalt.err (!%p3968_p7)
}
 0x1ca   : > { %s3972_s28 = scalar_lea.hbm %s5014_s8, 2048  ;;  %s3976_s24 = scalar_lea.hbm %s5076_s3, 8192 }
 0x1cb   : > { %p3973_p9 = scmp.ne.s32.totalorder %s5014_s8, %s3972_s28  ;;  %p3977_p12 = scmp.lt.s32.totalorder %s5014_s8, %s5076_s3 }
 0x1cc   : > { %p3978_p13 = scmp.lt.s32.totalorder %s3976_s24, %s3972_s28 }
 0x1cd   : > { %p3974_p10 = pnand %p3973_p9, %p4126_p3 }
 0x1ce   : > { %p3979_p0 = por %p3978_p13, %p3977_p12 }
 0x1cf   : > { %p3975_p11 = pneg %p3974_p10 }
 0x1d1   : > { %p3980_p1 = pnand %p3979_p0, %p3975_p11 }
 0x1d3   : > { %3983 = shalt.err (!%p3980_p1)
}
 0x1d4   : > { %s4053_s16 = smov 128   ;;  %s4054_s9 = smov 8  }
 0x1d5   : > { %3723 = dma.vmem_to_hbm [thread:$0]  (%p4126_p3), %s5016_s29, 2048, %s5014_s8, %s5022_s10, %s4053_s16, %s4053_s16, %s4054_s9  }
 0x1d6 PF: > { %p3729_p2 = scmp.ge.s32.totalorder %s4050_s19, 2  ;;  %s3019_s7 = sand.u32 1, %s4022_s12  }
 0x1d7   : > { %s3020_s11 = scalar_lea.sflag [#allocation4], %s3019_s7 }
 0x1d8   : > { %p3726_p4 = pnand %p3729_p2, %p4135_p8 }
 0x1da   : > { %p3727_p5 = pneg %p3726_p4 }
 0x1dc   : > { %4017 = dma.done.wait (%p3727_p5), %s3020_s11, 2048  }
 0x1dd   : > { %4019 = vsyncadd (%p3727_p5), %s3020_s11, 4294965248  ;;  %s16_s19 = sadd.s32 1, %s4050_s19   ;;  %s5127_s12 = smov %s4026_s13 }
 0x1de   : > { %p13_p6 = scmp.ge.s32.totalorder %s16_s19, 6   ;;  %s5128_s13 = smov %s4030_s14 }
 0x1df   : > { %s5129_s14 = smov %s4144_s30  ;;  %s5130_s15 = smov %s4042_s17 }
 0x1e0   : > { %s5131_s16 = smov %s4046_s18  ;;  %s5132_s17 = smov %s5135_s22 }
 0x1e1   : > { %s5133_s18 = smov %s5139_s23  ;;  %15 = sbr.rel (!%p13_p6) target bundleno = 5 (0x5), region = 69 }
 0x1e6   :  { %3025 = vsyncpa [#allocation4], 1 }
 0x1e7   :  { %3027 = vsyncpa [#allocation4 + $0x1], 1 }

</bundles_post_ra>
